<compile_context>
chip_gen: v5e
topology: v5e:2x2
jax: 0.10.0
libtpu: 0.0.40
codegen_flags: <defaults>
</compile_context>

<pallas_src>
import math
import functools

import jax
import jax.numpy as jnp
from jax import lax
from jax.experimental import pallas as pl
from jax.experimental.pallas import tpu as pltpu


# ----------------------------------------------------------------------------
# Kernel: one full transformer block for one sequence (grid iterates over B)
# ----------------------------------------------------------------------------
def _block_kernel(n_head, head_dim,
                  x_ref, ln1w_ref, ln1b_ref,
                  wqkv_ref, bqkv_ref, wproj_ref, bproj_ref,
                  ln2w_ref, ln2b_ref, wfc_ref, bfc_ref, wp2_ref, bp2_ref,
                  cos_ref, sin_ref,
                  o_ref):
    x = x_ref[0]                                   # (T, C) f32
    T, C = x.shape
    D = head_dim
    half = D // 2
    eps = 1e-5
    bf16 = jnp.bfloat16

    # ---- LayerNorm 1 (f32 stats, biased variance like torch.nn.LayerNorm) ----
    mu = jnp.mean(x, axis=-1, keepdims=True)
    var = jnp.mean((x - mu) ** 2, axis=-1, keepdims=True)
    h = (x - mu) * lax.rsqrt(var + eps) * ln1w_ref[...] + ln1b_ref[...]

    # ---- fused qkv projection (bf16 operands, f32 accumulation) ----
    # q/k weight columns are pre-permuted so each head comes out [even | odd].
    qkv = jnp.dot(h.astype(bf16), wqkv_ref[...],
                  preferred_element_type=jnp.float32) + bqkv_ref[...]
    q = qkv[:, 0 * C:1 * C]
    k = qkv[:, 1 * C:2 * C]
    v = qkv[:, 2 * C:3 * C]

    cos = cos_ref[...]                              # (T, D/2) f32
    sin = sin_ref[...]

    scale = 1.0 / math.sqrt(D)
    row = lax.broadcasted_iota(jnp.int32, (T, T), 0)
    col = lax.broadcasted_iota(jnp.int32, (T, T), 1)
    causal = col <= row
    neg = jnp.float32(-1e30)
    dn = (((1,), (1,)), ((), ()))                   # contract last dims, no batch

    y_parts = []
    for hh in range(n_head):
        lo = hh * D
        q1 = q[:, lo:lo + half]
        q2 = q[:, lo + half:lo + D]
        k1 = k[:, lo:lo + half]
        k2 = k[:, lo + half:lo + D]
        vh = v[:, lo:lo + D]

        # RoPE on the VPU: matches torch cat([x1*cos - x2*sin, x1*sin + x2*cos]).
        qh = jnp.concatenate([q1 * cos - q2 * sin, q1 * sin + q2 * cos], axis=-1)
        kh = jnp.concatenate([k1 * cos - k2 * sin, k1 * sin + k2 * cos], axis=-1)

        # scores: contract on the last dim directly (no kh.T); logits stay f32
        s = lax.dot_general(qh.astype(bf16), kh.astype(bf16), dn,
                            preferred_element_type=jnp.float32) * scale
        s = jnp.where(causal, s, neg)
        m = jnp.max(s, axis=-1, keepdims=True)
        e = jnp.exp(s - m)
        l = jnp.sum(e, axis=-1, keepdims=True)
        yh = jnp.dot(e.astype(bf16), vh.astype(bf16),
                     preferred_element_type=jnp.float32)
        # deferred softmax normalization: one (T,1) approx reciprocal per head
        y_parts.append(yh * pl.reciprocal(l, approx=True))

    # single full-width output projection (K = C)
    y = jnp.concatenate(y_parts, axis=-1)           # (T, C)
    attn_out = jnp.dot(y.astype(bf16), wproj_ref[...],
                       preferred_element_type=jnp.float32) + bproj_ref[...]
    # attn_dropout / resid_dropout (p=0.05) are identity at inference time.
    x_mid = x + attn_out

    # ---- LayerNorm 2 ----
    mu2 = jnp.mean(x_mid, axis=-1, keepdims=True)
    var2 = jnp.mean((x_mid - mu2) ** 2, axis=-1, keepdims=True)
    h2 = (x_mid - mu2) * lax.rsqrt(var2 + eps) * ln2w_ref[...] + ln2b_ref[...]

    # ---- MLP with GELU(approximate='tanh'); elementwise math stays f32 ----
    fc = jnp.dot(h2.astype(bf16), wfc_ref[...],
                 preferred_element_type=jnp.float32) + bfc_ref[...]
    g = 0.5 * fc * (1.0 + jnp.tanh(0.7978845608028654
                                   * (fc + 0.044715 * fc * fc * fc)))
    mlp_out = jnp.dot(g.astype(bf16), wp2_ref[...],
                      preferred_element_type=jnp.float32) + bp2_ref[...]

    o_ref[0] = x_mid + mlp_out


# ----------------------------------------------------------------------------
# One-time host preprocessing: weight permutation, bf16 casts, RoPE tables
# ----------------------------------------------------------------------------
def _deinterleave_perm(C, n_head):
    D = C // n_head
    half = D // 2
    idx = []
    for h in range(n_head):
        base = h * D
        idx.extend(base + 2 * j for j in range(half))      # evens  -> x1
        idx.extend(base + 2 * j + 1 for j in range(half))  # odds   -> x2
    return jnp.asarray(idx, dtype=jnp.int32)


def prepare_block_inputs(params, n_head, T):
    """Permute q/k weight columns, cast GEMM weights to bf16, build RoPE tables."""
    C = params['w_qkv'].shape[0]
    D = C // n_head
    assert C % n_head == 0 and D % 2 == 0
    perm = _deinterleave_perm(C, n_head)

    w_qkv, b_qkv = params['w_qkv'], params['b_qkv']
    wq = w_qkv[:, 0 * C:1 * C][:, perm]
    wk = w_qkv[:, 1 * C:2 * C][:, perm]
    wv = w_qkv[:, 2 * C:3 * C]
    bq = b_qkv[:, 0 * C:1 * C][:, perm]
    bk = b_qkv[:, 1 * C:2 * C][:, perm]
    bv = b_qkv[:, 2 * C:3 * C]

    freqs = jnp.arange(0, D, 2, dtype=jnp.float32) / D
    theta = 1000.0 ** (-freqs)
    pos = jnp.arange(T, dtype=jnp.float32)
    ang = pos[:, None] * theta[None, :]                     # (T, D/2)

    bf16 = jnp.bfloat16
    return {
        'ln1_w': params['ln1_w'], 'ln1_b': params['ln1_b'],
        'w_qkv': jnp.concatenate([wq, wk, wv], axis=1).astype(bf16),
        'b_qkv': jnp.concatenate([bq, bk, bv], axis=1),
        'w_proj': params['w_proj'].astype(bf16), 'b_proj': params['b_proj'],
        'ln2_w': params['ln2_w'], 'ln2_b': params['ln2_b'],
        'w_fc': params['w_fc'].astype(bf16), 'b_fc': params['b_fc'],
        'w_proj2': params['w_proj2'].astype(bf16), 'b_proj2': params['b_proj2'],
        'cos': jnp.cos(ang), 'sin': jnp.sin(ang),
    }


def _vmem_limit_bytes(T, C):
    wb = 12 * C * C * 2                               # bf16 GEMM weights
    pb = 13 * C * 4                                   # biases + LN params (f32)
    io = 2 * 2 * T * C * 4                            # double-buffered x / out tiles
    act = (3 * T * C + 8 * T * C + 6 * T * C + 4 * T * T) * 4
    est = 2 * wb + pb + io + act + (2 << 20)
    return int(min(max(est, 32 << 20), 64 << 20))


# ----------------------------------------------------------------------------
# Wrapper
# ----------------------------------------------------------------------------
def block_forward(x, prep, n_head):
    B, T, C = x.shape
    head_dim = C // n_head

    operands = (x,
                prep['ln1_w'], prep['ln1_b'],
                prep['w_qkv'], prep['b_qkv'],
                prep['w_proj'], prep['b_proj'],
                prep['ln2_w'], prep['ln2_b'],
                prep['w_fc'], prep['b_fc'],
                prep['w_proj2'], prep['b_proj2'],
                prep['cos'], prep['sin'])

    def full_spec(a):
        nd = a.ndim
        return pl.BlockSpec(a.shape, lambda b, _nd=nd: (0,) * _nd)

    in_specs = ([pl.BlockSpec((1, T, C), lambda b: (b, 0, 0))]
                + [full_spec(a) for a in operands[1:]])
    out_spec = pl.BlockSpec((1, T, C), lambda b: (b, 0, 0))

    kernel = functools.partial(_block_kernel, n_head, head_dim)
    return pl.pallas_call(
        kernel,
        out_shape=jax.ShapeDtypeStruct((B, T, C), jnp.float32),
        grid=(B,),
        in_specs=in_specs,
        out_specs=out_spec,
        compiler_params=pltpu.CompilerParams(
            dimension_semantics=("parallel",),
            vmem_limit_bytes=_vmem_limit_bytes(T, C)),
    )(*operands)


# ----------------------------------------------------------------------------
# Deterministic synthetic parameters (shapes from the module __init__)
# ----------------------------------------------------------------------------
def init_params(key, n_embd):
    C = n_embd
    ks = jax.random.split(key, 8)
    std = 0.02
    return {
        'ln1_w': jnp.ones((1, C), jnp.float32),
        'ln1_b': jnp.zeros((1, C), jnp.float32),
        'w_qkv': std * jax.random.normal(ks[0], (C, 3 * C), jnp.float32),
        'b_qkv': std * jax.random.normal(ks[1], (1, 3 * C), jnp.float32),
        'w_proj': std * jax.random.normal(ks[2], (C, C), jnp.float32),
        'b_proj': std * jax.random.normal(ks[3], (1, C), jnp.float32),
        'ln2_w': jnp.ones((1, C), jnp.float32),
        'ln2_b': jnp.zeros((1, C), jnp.float32),
        'w_fc': std * jax.random.normal(ks[4], (C, 4 * C), jnp.float32),
        'b_fc': std * jax.random.normal(ks[5], (1, 4 * C), jnp.float32),
        'w_proj2': std * jax.random.normal(ks[6], (4 * C, C), jnp.float32),
        'b_proj2': std * jax.random.normal(ks[7], (1, C), jnp.float32),
    }


# ----------------------------------------------------------------------------
# Pure-JAX reference (mirrors the PyTorch forward exactly, incl. RoPE variant)
# ----------------------------------------------------------------------------
def reference_block(x, params, n_head):
    B, T, C = x.shape
    D = C // n_head

    def ln(t, w, b):
        mu = jnp.mean(t, -1, keepdims=True)
        var = jnp.mean((t - mu) ** 2, -1, keepdims=True)
        return (t - mu) / jnp.sqrt(var + 1e-5) * w + b

    def rope(t):  # (B, H, T, D)
        freqs = jnp.arange(0, D, 2, dtype=jnp.float32) / D
        theta = 1000.0 ** (-freqs)
        pos = jnp.arange(T, dtype=jnp.float32)
        ang = pos[:, None] * theta[None, :]
        sin, cos = jnp.sin(ang), jnp.cos(ang)
        x1, x2 = t[..., 0::2], t[..., 1::2]
        return jnp.concatenate([x1 * cos - x2 * sin, x1 * sin + x2 * cos], axis=-1)

    h = ln(x, params['ln1_w'], params['ln1_b'])
    qkv = h @ params['w_qkv'] + params['b_qkv']
    q, k, v = jnp.split(qkv, 3, axis=-1)
    to_heads = lambda t: t.reshape(B, T, n_head, D).transpose(0, 2, 1, 3)
    q, k, v = to_heads(q), to_heads(k), to_heads(v)
    q, k = rope(q), rope(k)
    s = jnp.einsum('bhtd,bhsd->bhts', q, k) / math.sqrt(D)
    causal = jnp.tril(jnp.ones((T, T), bool))
    s = jnp.where(causal, s, -1e30)
    p = jax.nn.softmax(s, axis=-1)
    y = jnp.einsum('bhts,bhsd->bhtd', p, v)
    y = y.transpose(0, 2, 1, 3).reshape(B, T, C)
    y = y @ params['w_proj'] + params['b_proj']
    x = x + y
    h2 = ln(x, params['ln2_w'], params['ln2_b'])
    fc = h2 @ params['w_fc'] + params['b_fc']
    g = 0.5 * fc * (1.0 + jnp.tanh(0.7978845608028654 * (fc + 0.044715 * fc ** 3)))
    return x + (g @ params['w_proj2'] + params['b_proj2'])


if __name__ == "__main__":
    B, T, n_embd, n_head = 2, 8, 32, 4
    key = jax.random.PRNGKey(0)
    kx, kp = jax.random.split(key)
    x = jax.random.normal(kx, (B, T, n_embd), jnp.float32)
    params = init_params(kp, n_embd)

    # one-time preprocessing (hoisted out of the forward call)
    prep = jax.tree_util.tree_map(jax.block_until_ready,
                                  prepare_block_inputs(params, n_head, T))

    out = jax.block_until_ready(block_forward(x, prep, n_head))
    ref = reference_block(x, params, n_head)

    assert out.shape == (B, T, n_embd)
    assert bool(jnp.allclose(out, ref, atol=1e-2, rtol=1e-2)), "mismatch vs reference"
    print("KERNEL_OK")
</pallas_src>

<mosaic_0001>
module attributes {stable_mosaic.version = 11 : i64} {
  func.func @_block_kernel(%arg0: i32, %arg1: memref<1x8x32xf32, #tpu.memory_space<vmem>>, %arg2: memref<1x32xf32, #tpu.memory_space<vmem>>, %arg3: memref<1x32xf32, #tpu.memory_space<vmem>>, %arg4: memref<32x96xbf16, #tpu.memory_space<vmem>>, %arg5: memref<1x96xf32, #tpu.memory_space<vmem>>, %arg6: memref<32x32xbf16, #tpu.memory_space<vmem>>, %arg7: memref<1x32xf32, #tpu.memory_space<vmem>>, %arg8: memref<1x32xf32, #tpu.memory_space<vmem>>, %arg9: memref<1x32xf32, #tpu.memory_space<vmem>>, %arg10: memref<32x128xbf16, #tpu.memory_space<vmem>>, %arg11: memref<1x128xf32, #tpu.memory_space<vmem>>, %arg12: memref<128x32xbf16, #tpu.memory_space<vmem>>, %arg13: memref<1x32xf32, #tpu.memory_space<vmem>>, %arg14: memref<8x4xf32, #tpu.memory_space<vmem>>, %arg15: memref<8x4xf32, #tpu.memory_space<vmem>>, %arg16: memref<1x8x32xf32, #tpu.memory_space<vmem>>) attributes {dimension_semantics = [#tpu.dimension_semantics<parallel>], iteration_bounds = array<i64: 2>, scalar_prefetch = 0 : i64, scratch_operands = 0 : i64, tpu.core_type = #tpu.core_type<tc>, window_params = [{transform_indices = @transform_0, window_bounds = array<i64: 1, 8, 32>}, {pipeline_mode = #tpu.pipeline_mode<synchronous>, transform_indices = @transform_1, window_bounds = array<i64: 1, 32>}, {pipeline_mode = #tpu.pipeline_mode<synchronous>, transform_indices = @transform_2, window_bounds = array<i64: 1, 32>}, {pipeline_mode = #tpu.pipeline_mode<synchronous>, transform_indices = @transform_3, window_bounds = array<i64: 32, 96>}, {pipeline_mode = #tpu.pipeline_mode<synchronous>, transform_indices = @transform_4, window_bounds = array<i64: 1, 96>}, {pipeline_mode = #tpu.pipeline_mode<synchronous>, transform_indices = @transform_5, window_bounds = array<i64: 32, 32>}, {pipeline_mode = #tpu.pipeline_mode<synchronous>, transform_indices = @transform_6, window_bounds = array<i64: 1, 32>}, {pipeline_mode = #tpu.pipeline_mode<synchronous>, transform_indices = @transform_7, window_bounds = array<i64: 1, 32>}, {pipeline_mode = #tpu.pipeline_mode<synchronous>, transform_indices = @transform_8, window_bounds = array<i64: 1, 32>}, {pipeline_mode = #tpu.pipeline_mode<synchronous>, transform_indices = @transform_9, window_bounds = array<i64: 32, 128>}, {pipeline_mode = #tpu.pipeline_mode<synchronous>, transform_indices = @transform_10, window_bounds = array<i64: 1, 128>}, {pipeline_mode = #tpu.pipeline_mode<synchronous>, transform_indices = @transform_11, window_bounds = array<i64: 128, 32>}, {pipeline_mode = #tpu.pipeline_mode<synchronous>, transform_indices = @transform_12, window_bounds = array<i64: 1, 32>}, {pipeline_mode = #tpu.pipeline_mode<synchronous>, transform_indices = @transform_13, window_bounds = array<i64: 8, 4>}, {pipeline_mode = #tpu.pipeline_mode<synchronous>, transform_indices = @transform_14, window_bounds = array<i64: 8, 4>}, {transform_indices = @transform_15, window_bounds = array<i64: 1, 8, 32>}]} {
    %c0 = arith.constant 0 : index
    %c0_0 = arith.constant 0 : index
    %c0_1 = arith.constant 0 : index
    %0 = vector.load %arg1[%c0, %c0_0, %c0_1] : memref<1x8x32xf32, #tpu.memory_space<vmem>>, vector<1x8x32xf32>
    %1 = vector.shape_cast %0 : vector<1x8x32xf32> to vector<8x32xf32>
    %cst = arith.constant dense<0.000000e+00> : vector<8xf32>
    %2 = vector.multi_reduction <add>, %1, %cst [1] : vector<8x32xf32> to vector<8xf32>
    %3 = vector.shape_cast %2 : vector<8xf32> to vector<8x1xf32>
    %cst_2 = arith.constant 3.200000e+01 : f32
    %4 = vector.broadcast %cst_2 : f32 to vector<8x1xf32>
    %5 = arith.divf %3, %4 : vector<8x1xf32>
    %6 = vector.broadcast %5 : vector<8x1xf32> to vector<8x32xf32>
    %7 = arith.subf %1, %6 : vector<8x32xf32>
    %8 = arith.mulf %7, %7 : vector<8x32xf32>
    %cst_3 = arith.constant dense<0.000000e+00> : vector<8xf32>
    %9 = vector.multi_reduction <add>, %8, %cst_3 [1] : vector<8x32xf32> to vector<8xf32>
    %10 = vector.shape_cast %9 : vector<8xf32> to vector<8x1xf32>
    %cst_4 = arith.constant 3.200000e+01 : f32
    %11 = vector.broadcast %cst_4 : f32 to vector<8x1xf32>
    %12 = arith.divf %10, %11 : vector<8x1xf32>
    %13 = vector.broadcast %5 : vector<8x1xf32> to vector<8x32xf32>
    %14 = arith.subf %1, %13 : vector<8x32xf32>
    %cst_5 = arith.constant 9.99999974E-6 : f32
    %15 = vector.broadcast %cst_5 : f32 to vector<8x1xf32>
    %16 = arith.addf %12, %15 : vector<8x1xf32>
    %17 = math.rsqrt %16 : vector<8x1xf32>
    %18 = vector.broadcast %17 : vector<8x1xf32> to vector<8x32xf32>
    %19 = arith.mulf %14, %18 : vector<8x32xf32>
    %c0_6 = arith.constant 0 : index
    %c0_7 = arith.constant 0 : index
    %20 = vector.load %arg2[%c0_6, %c0_7] : memref<1x32xf32, #tpu.memory_space<vmem>>, vector<1x32xf32>
    %21 = vector.broadcast %20 : vector<1x32xf32> to vector<8x32xf32>
    %22 = arith.mulf %19, %21 : vector<8x32xf32>
    %c0_8 = arith.constant 0 : index
    %c0_9 = arith.constant 0 : index
    %23 = vector.load %arg3[%c0_8, %c0_9] : memref<1x32xf32, #tpu.memory_space<vmem>>, vector<1x32xf32>
    %24 = vector.broadcast %23 : vector<1x32xf32> to vector<8x32xf32>
    %25 = arith.addf %22, %24 : vector<8x32xf32>
    %26 = arith.truncf %25 : vector<8x32xf32> to vector<8x32xbf16>
    %c0_10 = arith.constant 0 : index
    %c0_11 = arith.constant 0 : index
    %27 = vector.load %arg4[%c0_10, %c0_11] : memref<32x96xbf16, #tpu.memory_space<vmem>>, vector<32x96xbf16>
    %cst_12 = arith.constant dense<0.000000e+00> : vector<8x96xf32>
    %28 = tpu.matmul %26, %27, %cst_12 {dimension_numbers = #tpu.dot_dimension_numbers<[1], [0], [0], [1], [0, 0, 1, 1], [], []>} : vector<8x32xbf16>, vector<32x96xbf16>, vector<8x96xf32> -> vector<8x96xf32>
    %c0_13 = arith.constant 0 : index
    %c0_14 = arith.constant 0 : index
    %29 = vector.load %arg5[%c0_13, %c0_14] : memref<1x96xf32, #tpu.memory_space<vmem>>, vector<1x96xf32>
    %30 = vector.broadcast %29 : vector<1x96xf32> to vector<8x96xf32>
    %31 = arith.addf %28, %30 : vector<8x96xf32>
    %32 = vector.extract_strided_slice %31 {offsets = [0, 0], sizes = [8, 32], strides = [1, 1]} : vector<8x96xf32> to vector<8x32xf32>
    %33 = vector.extract_strided_slice %31 {offsets = [0, 32], sizes = [8, 32], strides = [1, 1]} : vector<8x96xf32> to vector<8x32xf32>
    %34 = vector.extract_strided_slice %31 {offsets = [0, 64], sizes = [8, 32], strides = [1, 1]} : vector<8x96xf32> to vector<8x32xf32>
    %c0_15 = arith.constant 0 : index
    %c0_16 = arith.constant 0 : index
    %35 = vector.load %arg14[%c0_15, %c0_16] : memref<8x4xf32, #tpu.memory_space<vmem>>, vector<8x4xf32>
    %c0_17 = arith.constant 0 : index
    %c0_18 = arith.constant 0 : index
    %36 = vector.load %arg15[%c0_17, %c0_18] : memref<8x4xf32, #tpu.memory_space<vmem>>, vector<8x4xf32>
    %37 = tpu.iota {dimensions = array<i32: 0>} : vector<8x8xi32>
    %38 = tpu.iota {dimensions = array<i32: 1>} : vector<8x8xi32>
    %39 = arith.cmpi sle, %38, %37 : vector<8x8xi32>
    %40 = vector.extract_strided_slice %32 {offsets = [0, 0], sizes = [8, 4], strides = [1, 1]} : vector<8x32xf32> to vector<8x4xf32>
    %41 = vector.extract_strided_slice %32 {offsets = [0, 4], sizes = [8, 4], strides = [1, 1]} : vector<8x32xf32> to vector<8x4xf32>
    %42 = vector.extract_strided_slice %33 {offsets = [0, 0], sizes = [8, 4], strides = [1, 1]} : vector<8x32xf32> to vector<8x4xf32>
    %43 = vector.extract_strided_slice %33 {offsets = [0, 4], sizes = [8, 4], strides = [1, 1]} : vector<8x32xf32> to vector<8x4xf32>
    %44 = vector.extract_strided_slice %34 {offsets = [0, 0], sizes = [8, 8], strides = [1, 1]} : vector<8x32xf32> to vector<8x8xf32>
    %45 = arith.mulf %40, %35 : vector<8x4xf32>
    %46 = arith.mulf %41, %36 : vector<8x4xf32>
    %47 = arith.subf %45, %46 : vector<8x4xf32>
    %48 = arith.mulf %40, %36 : vector<8x4xf32>
    %49 = arith.mulf %41, %35 : vector<8x4xf32>
    %50 = arith.addf %48, %49 : vector<8x4xf32>
    %51 = tpu.concatenate %47, %50 in 1 : vector<8x4xf32>, vector<8x4xf32> -> vector<8x8xf32>
    %52 = arith.mulf %42, %35 : vector<8x4xf32>
    %53 = arith.mulf %43, %36 : vector<8x4xf32>
    %54 = arith.subf %52, %53 : vector<8x4xf32>
    %55 = arith.mulf %42, %36 : vector<8x4xf32>
    %56 = arith.mulf %43, %35 : vector<8x4xf32>
    %57 = arith.addf %55, %56 : vector<8x4xf32>
    %58 = tpu.concatenate %54, %57 in 1 : vector<8x4xf32>, vector<8x4xf32> -> vector<8x8xf32>
    %59 = arith.truncf %51 : vector<8x8xf32> to vector<8x8xbf16>
    %60 = arith.truncf %58 : vector<8x8xf32> to vector<8x8xbf16>
    %cst_19 = arith.constant dense<0.000000e+00> : vector<8x8xf32>
    %61 = tpu.matmul %59, %60, %cst_19 {dimension_numbers = #tpu.dot_dimension_numbers<[1], [1], [0], [0], [0, 0, 1, 0], [], []>} : vector<8x8xbf16>, vector<8x8xbf16>, vector<8x8xf32> -> vector<8x8xf32>
    %cst_20 = arith.constant 0.353553385 : f32
    %62 = vector.broadcast %cst_20 : f32 to vector<8x8xf32>
    %63 = arith.mulf %61, %62 : vector<8x8xf32>
    %cst_21 = arith.constant -1.000000e+30 : f32
    %64 = vector.broadcast %cst_21 : f32 to vector<8x8xf32>
    %65 = arith.select %39, %63, %64 : vector<8x8xi1>, vector<8x8xf32>
    %cst_22 = arith.constant dense<0xFF800000> : vector<8xf32>
    %66 = vector.multi_reduction <maximumf>, %65, %cst_22 [1] : vector<8x8xf32> to vector<8xf32>
    %67 = vector.shape_cast %66 : vector<8xf32> to vector<8x1xf32>
    %68 = vector.broadcast %67 : vector<8x1xf32> to vector<8x8xf32>
    %69 = arith.subf %65, %68 : vector<8x8xf32>
    %70 = math.exp %69 : vector<8x8xf32>
    %cst_23 = arith.constant dense<0.000000e+00> : vector<8xf32>
    %71 = vector.multi_reduction <add>, %70, %cst_23 [1] : vector<8x8xf32> to vector<8xf32>
    %72 = vector.shape_cast %71 : vector<8xf32> to vector<8x1xf32>
    %73 = arith.truncf %70 : vector<8x8xf32> to vector<8x8xbf16>
    %74 = arith.truncf %44 : vector<8x8xf32> to vector<8x8xbf16>
    %cst_24 = arith.constant dense<0.000000e+00> : vector<8x8xf32>
    %75 = tpu.matmul %73, %74, %cst_24 {dimension_numbers = #tpu.dot_dimension_numbers<[1], [0], [0], [1], [0, 0, 1, 1], [], []>} : vector<8x8xbf16>, vector<8x8xbf16>, vector<8x8xf32> -> vector<8x8xf32>
    %76 = tpu.reciprocal %72 {approx = true} : vector<8x1xf32> -> vector<8x1xf32>
    %77 = vector.broadcast %76 : vector<8x1xf32> to vector<8x8xf32>
    %78 = arith.mulf %75, %77 : vector<8x8xf32>
    %79 = vector.extract_strided_slice %32 {offsets = [0, 8], sizes = [8, 4], strides = [1, 1]} : vector<8x32xf32> to vector<8x4xf32>
    %80 = vector.extract_strided_slice %32 {offsets = [0, 12], sizes = [8, 4], strides = [1, 1]} : vector<8x32xf32> to vector<8x4xf32>
    %81 = vector.extract_strided_slice %33 {offsets = [0, 8], sizes = [8, 4], strides = [1, 1]} : vector<8x32xf32> to vector<8x4xf32>
    %82 = vector.extract_strided_slice %33 {offsets = [0, 12], sizes = [8, 4], strides = [1, 1]} : vector<8x32xf32> to vector<8x4xf32>
    %83 = vector.extract_strided_slice %34 {offsets = [0, 8], sizes = [8, 8], strides = [1, 1]} : vector<8x32xf32> to vector<8x8xf32>
    %84 = arith.mulf %79, %35 : vector<8x4xf32>
    %85 = arith.mulf %80, %36 : vector<8x4xf32>
    %86 = arith.subf %84, %85 : vector<8x4xf32>
    %87 = arith.mulf %79, %36 : vector<8x4xf32>
    %88 = arith.mulf %80, %35 : vector<8x4xf32>
    %89 = arith.addf %87, %88 : vector<8x4xf32>
    %90 = tpu.concatenate %86, %89 in 1 : vector<8x4xf32>, vector<8x4xf32> -> vector<8x8xf32>
    %91 = arith.mulf %81, %35 : vector<8x4xf32>
    %92 = arith.mulf %82, %36 : vector<8x4xf32>
    %93 = arith.subf %91, %92 : vector<8x4xf32>
    %94 = arith.mulf %81, %36 : vector<8x4xf32>
    %95 = arith.mulf %82, %35 : vector<8x4xf32>
    %96 = arith.addf %94, %95 : vector<8x4xf32>
    %97 = tpu.concatenate %93, %96 in 1 : vector<8x4xf32>, vector<8x4xf32> -> vector<8x8xf32>
    %98 = arith.truncf %90 : vector<8x8xf32> to vector<8x8xbf16>
    %99 = arith.truncf %97 : vector<8x8xf32> to vector<8x8xbf16>
    %cst_25 = arith.constant dense<0.000000e+00> : vector<8x8xf32>
    %100 = tpu.matmul %98, %99, %cst_25 {dimension_numbers = #tpu.dot_dimension_numbers<[1], [1], [0], [0], [0, 0, 1, 0], [], []>} : vector<8x8xbf16>, vector<8x8xbf16>, vector<8x8xf32> -> vector<8x8xf32>
    %cst_26 = arith.constant 0.353553385 : f32
    %101 = vector.broadcast %cst_26 : f32 to vector<8x8xf32>
    %102 = arith.mulf %100, %101 : vector<8x8xf32>
    %cst_27 = arith.constant -1.000000e+30 : f32
    %103 = vector.broadcast %cst_27 : f32 to vector<8x8xf32>
    %104 = arith.select %39, %102, %103 : vector<8x8xi1>, vector<8x8xf32>
    %cst_28 = arith.constant dense<0xFF800000> : vector<8xf32>
    %105 = vector.multi_reduction <maximumf>, %104, %cst_28 [1] : vector<8x8xf32> to vector<8xf32>
    %106 = vector.shape_cast %105 : vector<8xf32> to vector<8x1xf32>
    %107 = vector.broadcast %106 : vector<8x1xf32> to vector<8x8xf32>
    %108 = arith.subf %104, %107 : vector<8x8xf32>
    %109 = math.exp %108 : vector<8x8xf32>
    %cst_29 = arith.constant dense<0.000000e+00> : vector<8xf32>
    %110 = vector.multi_reduction <add>, %109, %cst_29 [1] : vector<8x8xf32> to vector<8xf32>
    %111 = vector.shape_cast %110 : vector<8xf32> to vector<8x1xf32>
    %112 = arith.truncf %109 : vector<8x8xf32> to vector<8x8xbf16>
    %113 = arith.truncf %83 : vector<8x8xf32> to vector<8x8xbf16>
    %cst_30 = arith.constant dense<0.000000e+00> : vector<8x8xf32>
    %114 = tpu.matmul %112, %113, %cst_30 {dimension_numbers = #tpu.dot_dimension_numbers<[1], [0], [0], [1], [0, 0, 1, 1], [], []>} : vector<8x8xbf16>, vector<8x8xbf16>, vector<8x8xf32> -> vector<8x8xf32>
    %115 = tpu.reciprocal %111 {approx = true} : vector<8x1xf32> -> vector<8x1xf32>
    %116 = vector.broadcast %115 : vector<8x1xf32> to vector<8x8xf32>
    %117 = arith.mulf %114, %116 : vector<8x8xf32>
    %118 = vector.extract_strided_slice %32 {offsets = [0, 16], sizes = [8, 4], strides = [1, 1]} : vector<8x32xf32> to vector<8x4xf32>
    %119 = vector.extract_strided_slice %32 {offsets = [0, 20], sizes = [8, 4], strides = [1, 1]} : vector<8x32xf32> to vector<8x4xf32>
    %120 = vector.extract_strided_slice %33 {offsets = [0, 16], sizes = [8, 4], strides = [1, 1]} : vector<8x32xf32> to vector<8x4xf32>
    %121 = vector.extract_strided_slice %33 {offsets = [0, 20], sizes = [8, 4], strides = [1, 1]} : vector<8x32xf32> to vector<8x4xf32>
    %122 = vector.extract_strided_slice %34 {offsets = [0, 16], sizes = [8, 8], strides = [1, 1]} : vector<8x32xf32> to vector<8x8xf32>
    %123 = arith.mulf %118, %35 : vector<8x4xf32>
    %124 = arith.mulf %119, %36 : vector<8x4xf32>
    %125 = arith.subf %123, %124 : vector<8x4xf32>
    %126 = arith.mulf %118, %36 : vector<8x4xf32>
    %127 = arith.mulf %119, %35 : vector<8x4xf32>
    %128 = arith.addf %126, %127 : vector<8x4xf32>
    %129 = tpu.concatenate %125, %128 in 1 : vector<8x4xf32>, vector<8x4xf32> -> vector<8x8xf32>
    %130 = arith.mulf %120, %35 : vector<8x4xf32>
    %131 = arith.mulf %121, %36 : vector<8x4xf32>
    %132 = arith.subf %130, %131 : vector<8x4xf32>
    %133 = arith.mulf %120, %36 : vector<8x4xf32>
    %134 = arith.mulf %121, %35 : vector<8x4xf32>
    %135 = arith.addf %133, %134 : vector<8x4xf32>
    %136 = tpu.concatenate %132, %135 in 1 : vector<8x4xf32>, vector<8x4xf32> -> vector<8x8xf32>
    %137 = arith.truncf %129 : vector<8x8xf32> to vector<8x8xbf16>
    %138 = arith.truncf %136 : vector<8x8xf32> to vector<8x8xbf16>
    %cst_31 = arith.constant dense<0.000000e+00> : vector<8x8xf32>
    %139 = tpu.matmul %137, %138, %cst_31 {dimension_numbers = #tpu.dot_dimension_numbers<[1], [1], [0], [0], [0, 0, 1, 0], [], []>} : vector<8x8xbf16>, vector<8x8xbf16>, vector<8x8xf32> -> vector<8x8xf32>
    %cst_32 = arith.constant 0.353553385 : f32
    %140 = vector.broadcast %cst_32 : f32 to vector<8x8xf32>
    %141 = arith.mulf %139, %140 : vector<8x8xf32>
    %cst_33 = arith.constant -1.000000e+30 : f32
    %142 = vector.broadcast %cst_33 : f32 to vector<8x8xf32>
    %143 = arith.select %39, %141, %142 : vector<8x8xi1>, vector<8x8xf32>
    %cst_34 = arith.constant dense<0xFF800000> : vector<8xf32>
    %144 = vector.multi_reduction <maximumf>, %143, %cst_34 [1] : vector<8x8xf32> to vector<8xf32>
    %145 = vector.shape_cast %144 : vector<8xf32> to vector<8x1xf32>
    %146 = vector.broadcast %145 : vector<8x1xf32> to vector<8x8xf32>
    %147 = arith.subf %143, %146 : vector<8x8xf32>
    %148 = math.exp %147 : vector<8x8xf32>
    %cst_35 = arith.constant dense<0.000000e+00> : vector<8xf32>
    %149 = vector.multi_reduction <add>, %148, %cst_35 [1] : vector<8x8xf32> to vector<8xf32>
    %150 = vector.shape_cast %149 : vector<8xf32> to vector<8x1xf32>
    %151 = arith.truncf %148 : vector<8x8xf32> to vector<8x8xbf16>
    %152 = arith.truncf %122 : vector<8x8xf32> to vector<8x8xbf16>
    %cst_36 = arith.constant dense<0.000000e+00> : vector<8x8xf32>
    %153 = tpu.matmul %151, %152, %cst_36 {dimension_numbers = #tpu.dot_dimension_numbers<[1], [0], [0], [1], [0, 0, 1, 1], [], []>} : vector<8x8xbf16>, vector<8x8xbf16>, vector<8x8xf32> -> vector<8x8xf32>
    %154 = tpu.reciprocal %150 {approx = true} : vector<8x1xf32> -> vector<8x1xf32>
    %155 = vector.broadcast %154 : vector<8x1xf32> to vector<8x8xf32>
    %156 = arith.mulf %153, %155 : vector<8x8xf32>
    %157 = vector.extract_strided_slice %32 {offsets = [0, 24], sizes = [8, 4], strides = [1, 1]} : vector<8x32xf32> to vector<8x4xf32>
    %158 = vector.extract_strided_slice %32 {offsets = [0, 28], sizes = [8, 4], strides = [1, 1]} : vector<8x32xf32> to vector<8x4xf32>
    %159 = vector.extract_strided_slice %33 {offsets = [0, 24], sizes = [8, 4], strides = [1, 1]} : vector<8x32xf32> to vector<8x4xf32>
    %160 = vector.extract_strided_slice %33 {offsets = [0, 28], sizes = [8, 4], strides = [1, 1]} : vector<8x32xf32> to vector<8x4xf32>
    %161 = vector.extract_strided_slice %34 {offsets = [0, 24], sizes = [8, 8], strides = [1, 1]} : vector<8x32xf32> to vector<8x8xf32>
    %162 = arith.mulf %157, %35 : vector<8x4xf32>
    %163 = arith.mulf %158, %36 : vector<8x4xf32>
    %164 = arith.subf %162, %163 : vector<8x4xf32>
    %165 = arith.mulf %157, %36 : vector<8x4xf32>
    %166 = arith.mulf %158, %35 : vector<8x4xf32>
    %167 = arith.addf %165, %166 : vector<8x4xf32>
    %168 = tpu.concatenate %164, %167 in 1 : vector<8x4xf32>, vector<8x4xf32> -> vector<8x8xf32>
    %169 = arith.mulf %159, %35 : vector<8x4xf32>
    %170 = arith.mulf %160, %36 : vector<8x4xf32>
    %171 = arith.subf %169, %170 : vector<8x4xf32>
    %172 = arith.mulf %159, %36 : vector<8x4xf32>
    %173 = arith.mulf %160, %35 : vector<8x4xf32>
    %174 = arith.addf %172, %173 : vector<8x4xf32>
    %175 = tpu.concatenate %171, %174 in 1 : vector<8x4xf32>, vector<8x4xf32> -> vector<8x8xf32>
    %176 = arith.truncf %168 : vector<8x8xf32> to vector<8x8xbf16>
    %177 = arith.truncf %175 : vector<8x8xf32> to vector<8x8xbf16>
    %cst_37 = arith.constant dense<0.000000e+00> : vector<8x8xf32>
    %178 = tpu.matmul %176, %177, %cst_37 {dimension_numbers = #tpu.dot_dimension_numbers<[1], [1], [0], [0], [0, 0, 1, 0], [], []>} : vector<8x8xbf16>, vector<8x8xbf16>, vector<8x8xf32> -> vector<8x8xf32>
    %cst_38 = arith.constant 0.353553385 : f32
    %179 = vector.broadcast %cst_38 : f32 to vector<8x8xf32>
    %180 = arith.mulf %178, %179 : vector<8x8xf32>
    %cst_39 = arith.constant -1.000000e+30 : f32
    %181 = vector.broadcast %cst_39 : f32 to vector<8x8xf32>
    %182 = arith.select %39, %180, %181 : vector<8x8xi1>, vector<8x8xf32>
    %cst_40 = arith.constant dense<0xFF800000> : vector<8xf32>
    %183 = vector.multi_reduction <maximumf>, %182, %cst_40 [1] : vector<8x8xf32> to vector<8xf32>
    %184 = vector.shape_cast %183 : vector<8xf32> to vector<8x1xf32>
    %185 = vector.broadcast %184 : vector<8x1xf32> to vector<8x8xf32>
    %186 = arith.subf %182, %185 : vector<8x8xf32>
    %187 = math.exp %186 : vector<8x8xf32>
    %cst_41 = arith.constant dense<0.000000e+00> : vector<8xf32>
    %188 = vector.multi_reduction <add>, %187, %cst_41 [1] : vector<8x8xf32> to vector<8xf32>
    %189 = vector.shape_cast %188 : vector<8xf32> to vector<8x1xf32>
    %190 = arith.truncf %187 : vector<8x8xf32> to vector<8x8xbf16>
    %191 = arith.truncf %161 : vector<8x8xf32> to vector<8x8xbf16>
    %cst_42 = arith.constant dense<0.000000e+00> : vector<8x8xf32>
    %192 = tpu.matmul %190, %191, %cst_42 {dimension_numbers = #tpu.dot_dimension_numbers<[1], [0], [0], [1], [0, 0, 1, 1], [], []>} : vector<8x8xbf16>, vector<8x8xbf16>, vector<8x8xf32> -> vector<8x8xf32>
    %193 = tpu.reciprocal %189 {approx = true} : vector<8x1xf32> -> vector<8x1xf32>
    %194 = vector.broadcast %193 : vector<8x1xf32> to vector<8x8xf32>
    %195 = arith.mulf %192, %194 : vector<8x8xf32>
    %196 = tpu.concatenate %78, %117, %156, %195 in 1 : vector<8x8xf32>, vector<8x8xf32>, vector<8x8xf32>, vector<8x8xf32> -> vector<8x32xf32>
    %197 = arith.truncf %196 : vector<8x32xf32> to vector<8x32xbf16>
    %c0_43 = arith.constant 0 : index
    %c0_44 = arith.constant 0 : index
    %198 = vector.load %arg6[%c0_43, %c0_44] : memref<32x32xbf16, #tpu.memory_space<vmem>>, vector<32x32xbf16>
    %cst_45 = arith.constant dense<0.000000e+00> : vector<8x32xf32>
    %199 = tpu.matmul %197, %198, %cst_45 {dimension_numbers = #tpu.dot_dimension_numbers<[1], [0], [0], [1], [0, 0, 1, 1], [], []>} : vector<8x32xbf16>, vector<32x32xbf16>, vector<8x32xf32> -> vector<8x32xf32>
    %c0_46 = arith.constant 0 : index
    %c0_47 = arith.constant 0 : index
    %200 = vector.load %arg7[%c0_46, %c0_47] : memref<1x32xf32, #tpu.memory_space<vmem>>, vector<1x32xf32>
    %201 = vector.broadcast %200 : vector<1x32xf32> to vector<8x32xf32>
    %202 = arith.addf %199, %201 : vector<8x32xf32>
    %203 = arith.addf %1, %202 : vector<8x32xf32>
    %cst_48 = arith.constant dense<0.000000e+00> : vector<8xf32>
    %204 = vector.multi_reduction <add>, %203, %cst_48 [1] : vector<8x32xf32> to vector<8xf32>
    %205 = vector.shape_cast %204 : vector<8xf32> to vector<8x1xf32>
    %cst_49 = arith.constant 3.200000e+01 : f32
    %206 = vector.broadcast %cst_49 : f32 to vector<8x1xf32>
    %207 = arith.divf %205, %206 : vector<8x1xf32>
    %208 = vector.broadcast %207 : vector<8x1xf32> to vector<8x32xf32>
    %209 = arith.subf %203, %208 : vector<8x32xf32>
    %210 = arith.mulf %209, %209 : vector<8x32xf32>
    %cst_50 = arith.constant dense<0.000000e+00> : vector<8xf32>
    %211 = vector.multi_reduction <add>, %210, %cst_50 [1] : vector<8x32xf32> to vector<8xf32>
    %212 = vector.shape_cast %211 : vector<8xf32> to vector<8x1xf32>
    %cst_51 = arith.constant 3.200000e+01 : f32
    %213 = vector.broadcast %cst_51 : f32 to vector<8x1xf32>
    %214 = arith.divf %212, %213 : vector<8x1xf32>
    %215 = vector.broadcast %207 : vector<8x1xf32> to vector<8x32xf32>
    %216 = arith.subf %203, %215 : vector<8x32xf32>
    %cst_52 = arith.constant 9.99999974E-6 : f32
    %217 = vector.broadcast %cst_52 : f32 to vector<8x1xf32>
    %218 = arith.addf %214, %217 : vector<8x1xf32>
    %219 = math.rsqrt %218 : vector<8x1xf32>
    %220 = vector.broadcast %219 : vector<8x1xf32> to vector<8x32xf32>
    %221 = arith.mulf %216, %220 : vector<8x32xf32>
    %c0_53 = arith.constant 0 : index
    %c0_54 = arith.constant 0 : index
    %222 = vector.load %arg8[%c0_53, %c0_54] : memref<1x32xf32, #tpu.memory_space<vmem>>, vector<1x32xf32>
    %223 = vector.broadcast %222 : vector<1x32xf32> to vector<8x32xf32>
    %224 = arith.mulf %221, %223 : vector<8x32xf32>
    %c0_55 = arith.constant 0 : index
    %c0_56 = arith.constant 0 : index
    %225 = vector.load %arg9[%c0_55, %c0_56] : memref<1x32xf32, #tpu.memory_space<vmem>>, vector<1x32xf32>
    %226 = vector.broadcast %225 : vector<1x32xf32> to vector<8x32xf32>
    %227 = arith.addf %224, %226 : vector<8x32xf32>
    %228 = arith.truncf %227 : vector<8x32xf32> to vector<8x32xbf16>
    %c0_57 = arith.constant 0 : index
    %c0_58 = arith.constant 0 : index
    %229 = vector.load %arg10[%c0_57, %c0_58] : memref<32x128xbf16, #tpu.memory_space<vmem>>, vector<32x128xbf16>
    %cst_59 = arith.constant dense<0.000000e+00> : vector<8x128xf32>
    %230 = tpu.matmul %228, %229, %cst_59 {dimension_numbers = #tpu.dot_dimension_numbers<[1], [0], [0], [1], [0, 0, 1, 1], [], []>} : vector<8x32xbf16>, vector<32x128xbf16>, vector<8x128xf32> -> vector<8x128xf32>
    %c0_60 = arith.constant 0 : index
    %c0_61 = arith.constant 0 : index
    %231 = vector.load %arg11[%c0_60, %c0_61] : memref<1x128xf32, #tpu.memory_space<vmem>>, vector<1x128xf32>
    %232 = vector.broadcast %231 : vector<1x128xf32> to vector<8x128xf32>
    %233 = arith.addf %230, %232 : vector<8x128xf32>
    %cst_62 = arith.constant 5.000000e-01 : f32
    %234 = vector.broadcast %cst_62 : f32 to vector<8x128xf32>
    %235 = arith.mulf %234, %233 : vector<8x128xf32>
    %cst_63 = arith.constant 4.471500e-02 : f32
    %236 = vector.broadcast %cst_63 : f32 to vector<8x128xf32>
    %237 = arith.mulf %236, %233 : vector<8x128xf32>
    %238 = arith.mulf %237, %233 : vector<8x128xf32>
    %239 = arith.mulf %238, %233 : vector<8x128xf32>
    %240 = arith.addf %233, %239 : vector<8x128xf32>
    %cst_64 = arith.constant 0.797884583 : f32
    %241 = vector.broadcast %cst_64 : f32 to vector<8x128xf32>
    %242 = arith.mulf %241, %240 : vector<8x128xf32>
    %243 = math.tanh %242 : vector<8x128xf32>
    %cst_65 = arith.constant 1.000000e+00 : f32
    %244 = vector.broadcast %cst_65 : f32 to vector<8x128xf32>
    %245 = arith.addf %244, %243 : vector<8x128xf32>
    %246 = arith.mulf %235, %245 : vector<8x128xf32>
    %247 = arith.truncf %246 : vector<8x128xf32> to vector<8x128xbf16>
    %c0_66 = arith.constant 0 : index
    %c0_67 = arith.constant 0 : index
    %248 = vector.load %arg12[%c0_66, %c0_67] : memref<128x32xbf16, #tpu.memory_space<vmem>>, vector<128x32xbf16>
    %cst_68 = arith.constant dense<0.000000e+00> : vector<8x32xf32>
    %249 = tpu.matmul %247, %248, %cst_68 {dimension_numbers = #tpu.dot_dimension_numbers<[1], [0], [0], [1], [0, 0, 1, 1], [], []>} : vector<8x128xbf16>, vector<128x32xbf16>, vector<8x32xf32> -> vector<8x32xf32>
    %c0_69 = arith.constant 0 : index
    %c0_70 = arith.constant 0 : index
    %250 = vector.load %arg13[%c0_69, %c0_70] : memref<1x32xf32, #tpu.memory_space<vmem>>, vector<1x32xf32>
    %251 = vector.broadcast %250 : vector<1x32xf32> to vector<8x32xf32>
    %252 = arith.addf %249, %251 : vector<8x32xf32>
    %253 = arith.addf %203, %252 : vector<8x32xf32>
    %c0_71 = arith.constant 0 : index
    %c0_72 = arith.constant 0 : index
    %c0_73 = arith.constant 0 : index
    %254 = vector.load %arg16[%c0_71, %c0_72, %c0_73] : memref<1x8x32xf32, #tpu.memory_space<vmem>>, vector<1x8x32xf32>
    %255 = vector.shape_cast %254 : vector<1x8x32xf32> to vector<8x32xf32>
    %256 = vector.shape_cast %253 : vector<8x32xf32> to vector<1x8x32xf32>
    tpu.vector_store %arg16[%c0_71, %c0_72, %c0_73], %256 {strides = array<i32>} : memref<1x8x32xf32, #tpu.memory_space<vmem>>, vector<1x8x32xf32>,
    return
  }
  func.func @transform_0(%arg0: i32) -> (i32, i32, i32) {
    %c0_i32 = arith.constant 0 : i32
    %c0_i32_0 = arith.constant 0 : i32
    %c0_i32_1 = arith.constant 0 : i32
    return %arg0, %c0_i32, %c0_i32_0 : i32, i32, i32
  }
  func.func @transform_1(%arg0: i32) -> (i32, i32) {
    %c0_i32 = arith.constant 0 : i32
    %c0_i32_0 = arith.constant 0 : i32
    %c0_i32_1 = arith.constant 0 : i32
    return %c0_i32, %c0_i32_0 : i32, i32
  }
  func.func @transform_2(%arg0: i32) -> (i32, i32) {
    %c0_i32 = arith.constant 0 : i32
    %c0_i32_0 = arith.constant 0 : i32
    %c0_i32_1 = arith.constant 0 : i32
    return %c0_i32, %c0_i32_0 : i32, i32
  }
  func.func @transform_3(%arg0: i32) -> (i32, i32) {
    %c0_i32 = arith.constant 0 : i32
    %c0_i32_0 = arith.constant 0 : i32
    %c0_i32_1 = arith.constant 0 : i32
    return %c0_i32, %c0_i32_0 : i32, i32
  }
  func.func @transform_4(%arg0: i32) -> (i32, i32) {
    %c0_i32 = arith.constant 0 : i32
    %c0_i32_0 = arith.constant 0 : i32
    %c0_i32_1 = arith.constant 0 : i32
    return %c0_i32, %c0_i32_0 : i32, i32
  }
  func.func @transform_5(%arg0: i32) -> (i32, i32) {
    %c0_i32 = arith.constant 0 : i32
    %c0_i32_0 = arith.constant 0 : i32
    %c0_i32_1 = arith.constant 0 : i32
    return %c0_i32, %c0_i32_0 : i32, i32
  }
  func.func @transform_6(%arg0: i32) -> (i32, i32) {
    %c0_i32 = arith.constant 0 : i32
    %c0_i32_0 = arith.constant 0 : i32
    %c0_i32_1 = arith.constant 0 : i32
    return %c0_i32, %c0_i32_0 : i32, i32
  }
  func.func @transform_7(%arg0: i32) -> (i32, i32) {
    %c0_i32 = arith.constant 0 : i32
    %c0_i32_0 = arith.constant 0 : i32
    %c0_i32_1 = arith.constant 0 : i32
    return %c0_i32, %c0_i32_0 : i32, i32
  }
  func.func @transform_8(%arg0: i32) -> (i32, i32) {
    %c0_i32 = arith.constant 0 : i32
    %c0_i32_0 = arith.constant 0 : i32
    %c0_i32_1 = arith.constant 0 : i32
    return %c0_i32, %c0_i32_0 : i32, i32
  }
  func.func @transform_9(%arg0: i32) -> (i32, i32) {
    %c0_i32 = arith.constant 0 : i32
    %c0_i32_0 = arith.constant 0 : i32
    %c0_i32_1 = arith.constant 0 : i32
    return %c0_i32, %c0_i32_0 : i32, i32
  }
  func.func @transform_10(%arg0: i32) -> (i32, i32) {
    %c0_i32 = arith.constant 0 : i32
    %c0_i32_0 = arith.constant 0 : i32
    %c0_i32_1 = arith.constant 0 : i32
    return %c0_i32, %c0_i32_0 : i32, i32
  }
  func.func @transform_11(%arg0: i32) -> (i32, i32) {
    %c0_i32 = arith.constant 0 : i32
    %c0_i32_0 = arith.constant 0 : i32
    %c0_i32_1 = arith.constant 0 : i32
    return %c0_i32, %c0_i32_0 : i32, i32
  }
  func.func @transform_12(%arg0: i32) -> (i32, i32) {
    %c0_i32 = arith.constant 0 : i32
    %c0_i32_0 = arith.constant 0 : i32
    %c0_i32_1 = arith.constant 0 : i32
    return %c0_i32, %c0_i32_0 : i32, i32
  }
  func.func @transform_13(%arg0: i32) -> (i32, i32) {
    %c0_i32 = arith.constant 0 : i32
    %c0_i32_0 = arith.constant 0 : i32
    %c0_i32_1 = arith.constant 0 : i32
    return %c0_i32, %c0_i32_0 : i32, i32
  }
  func.func @transform_14(%arg0: i32) -> (i32, i32) {
    %c0_i32 = arith.constant 0 : i32
    %c0_i32_0 = arith.constant 0 : i32
    %c0_i32_1 = arith.constant 0 : i32
    return %c0_i32, %c0_i32_0 : i32, i32
  }
  func.func @transform_15(%arg0: i32) -> (i32, i32, i32) {
    %c0_i32 = arith.constant 0 : i32
    %c0_i32_0 = arith.constant 0 : i32
    %c0_i32_1 = arith.constant 0 : i32
    return %arg0, %c0_i32, %c0_i32_0 : i32, i32, i32
  }
}

</mosaic_0001>

<bundles_post_ra>
// kernel: tpu_custom_call.1
= control target key start
LH: loop header
LB: loop body
LE: loop exit
PB: predicated region body
PF: predicated region fallthrough
CT: control target
= control target key end

     0   :  { %s2093_s0 = inlined_call_operand.vmem [shape: f32[2,8,32], index: 0, kind: input, shape index: {}]   ;;  %s2094_s1 = inlined_call_operand.vmem [shape: f32[1,32], index: 1, kind: input, shape index: {}]   ;;  %s2095_s2 = inlined_call_operand.vmem [shape: f32[1,32], index: 2, kind: input, shape index: {}]   ;;  %s2096_s3 = inlined_call_operand.vmem [shape: bf16[32,96], index: 3, kind: input, shape index: {}]   ;;  %s2097_s4 = inlined_call_operand.vmem [shape: f32[1,96], index: 4, kind: input, shape index: {}]   ;;  %s2098_s5 = inlined_call_operand.vmem [shape: bf16[32,32], index: 5, kind: input, shape index: {}]   ;;  %s2099_s6 = inlined_call_operand.vmem [shape: f32[1,32], index: 6, kind: input, shape index: {}]   ;;  %s2100_s7 = inlined_call_operand.vmem [shape: f32[1,32], index: 7, kind: input, shape index: {}]   ;;  %s2101_s8 = inlined_call_operand.vmem [shape: f32[1,32], index: 8, kind: input, shape index: {}]   ;;  %s2102_s9 = inlined_call_operand.vmem [shape: bf16[32,128], index: 9, kind: input, shape index: {}]   ;;  %s2103_s10 = inlined_call_operand.vmem [shape: f32[1,128], index: 10, kind: input, shape index: {}]   ;;  %s2104_s11 = inlined_call_operand.vmem [shape: bf16[128,32], index: 11, kind: input, shape index: {}]   ;;  %s2105_s12 = inlined_call_operand.vmem [shape: f32[1,32], index: 12, kind: input, shape index: {}]   ;;  %s2106_s13 = inlined_call_operand.vmem [shape: f32[8,4], index: 13, kind: input, shape index: {}]   ;;  %s2107_s14 = inlined_call_operand.vmem [shape: f32[8,4], index: 14, kind: input, shape index: {}]   ;;  %s2108_s15 = inlined_call_operand.hbm [shape: f32[2,8,32], index: 15, kind: output, shape index: {}]  }
   0x1   :  { %2111 = sst [smem:[#allocation7_spill]] %s2093_s0 }
   0x2   :  { %2112 = sst [smem:[#allocation8_spill]] %s2094_s1 }
   0x3   :  { %2113 = sst [smem:[#allocation9_spill]] %s2095_s2 }
   0x4   :  { %2114 = sst [smem:[#allocation10_spill]] %s2096_s3 }
   0x5   :  { %20 = vsyncpa [#allocation3], 0 }
   0x6   :  { %22 = vsyncpa [#allocation3 + $0x1], 0  ;;  %s1737_s18 = smov 0   ;;  %s1739_s19 = smov 0  }
   0x7   :  { %s1741_s20 = smov 0   ;;  %s1743_s21 = smov 0  }
   0x8 LB: > { %2115 = sst [smem:[#allocation5_spill]] %s1620_s20  ;;  %s1758_s22 = sadd.s32 4294967295, %s1624_s21   ;;  %s1624_s21 = sphi %s1743_s21, %s2128_s21   ;;  %s1620_s20 = sphi %s1741_s20, %s2125_s20   ;;  %s1616_s19 = sphi %s1739_s19, %s2127_s19   ;;  %s1612_s18 = sphi %s1737_s18, %s2126_s18  }
   0x9   : > { %s1369_s23 = sadd.s32 4294967294, %s1624_s21   ;;  %s1762_s24 = sadd.s32 1, %s1624_s21  }
   0xa   : > { %s355_s25 = sadd.s32 1, %s1620_s20  ;;  %s352_s26 = ssub.s32 %s1624_s21, %s1762_s24 }
   0xb   : > { %p365_p0 = scmp.ne.s32.totalorder %s1620_s20, %s1616_s19  ;;  %p353_p1 = scmp.eq.s32.totalorder %s352_s26, 0 }
   0xc   : > { %p366_p2 = scmp.eq.s32.totalorder %s1758_s22, 1  ;;  %p371_p3 = scmp.ne.s32.totalorder %s1616_s19, %s1612_s18 }
   0xd   : > { %p372_p4 = scmp.eq.s32.totalorder %s1369_s23, 1  ;;  %p1372_p7 = scmp.ge.s32.totalorder %s1624_s21, 1 }
   0xe   : > { %s1773_s27 = scalar_select %p353_p1, %s1620_s20, %s355_s25  }
   0xf   : > { %p1775_p5 = por %p366_p2, %p365_p0  ;;  %p1779_p6 = por %p372_p4, %p371_p3 }
  0x10   : > { %2116 = sst [smem:[#allocation6_spill]] %s1773_s27  ;;  %p439_p8 = scmp.lt.s32.totalorder %s1624_s21, 3 }
  0x12   : > { %p440_p9 = pnand %p1372_p7, %p439_p8 }
  0x13   : > { %p486_p10 = scmp.lt.s32.totalorder (!%p440_p9), %s1758_s22, 1  ;;  %s2119_s0 = sld [smem:[#allocation7_spill]] (!%p440_p9) }
  0x14   : > { %443 = sbr.rel (%p440_p9) target bundleno = 2174 (0x87e), region = 80  ;;  %s2120_s3 = sld [smem:[#allocation10_spill]] (!%p440_p9) }
  0x15   : > { %s1628_s26 = smov (!%p440_p9), 32   ;;  %s2121_s1 = sld [smem:[#allocation8_spill]] (!%p440_p9) }
  0x16   : > { %s2122_s2 = sld [smem:[#allocation9_spill]] (!%p440_p9)  ;;  %s1632_s20 = smov (!%p440_p9), 44  }
  0x17   : > { %s1633_s27 = smov (!%p440_p9), 12   ;;  %s1635_s17 = smov (!%p440_p9), 28  }
  0x18   : > { %s1637_s23 = smov (!%p440_p9), 40  }
  0x19   : > { %s487_s30 = scalar_select %p486_p10, %s1758_s22, 1  ;;  %vm492_vm0 = vcmask 261120   ;;  %v1626_v2 = vmov 32.0   ;;  %v1808_v16 = vld [vmem:[%s2107_s14] sm:$0xff]  ;;  %vm602_vm5 = vcmask 31744   ;;  %vm641_vm6 = vcmask 64512  }
  0x1a   : > { %1538 = vrcp.f32 %v1626_v2  ;;  %v1447_v14 = vld [vmem:[%s2120_s3 + $0x8] sm:$0xff]  ;;  %v1446_v15 = vld [vmem:[%s2120_s3] sm:$0xff]  ;;  %vm680_vm8 = vcmask 1043456   ;;  %vm1090_vm9 = vcmask 130048   ;;  %vm1092_vm10 = vcmask 195584  }
  0x1b   : > { %s1374_s16 = sshll.u32 %s487_s30, 3  ;;  %562 = vmatpush.bf16.msra.mxu0 %v1447_v14  ;;  %v1814_v18 = vld [vmem:[%s2106_s13] sm:$0xff]  ;;  %s1629_s30 = smov 4  }
  0x1c   : > { %s489_s25 = scalar_lea.vmem %s2119_s0, %s1374_s16  ;;  %s1627_s0 = smov 36   ;;  %589 = vrot.lane.b32.xlu2 %v1814_v18, %s1629_s30  ;;  %v1530_v27 = vld [vmem:[%s2121_s1] ss:$0 sm:$0xff] }
  0x1d   : > { %v1790_v0 = vld [vmem:[%s489_s25] sm:$0xff]  ;;  %608 = vrot.lane.b32.xlu1 %v1808_v16, %s1627_s0  ;;  %s1630_s25 = smov 124   ;;  %s1634_s16 = smov 96  }
  0x1e   : > { %v493_v1 = vsel %vm492_vm0, %v1790_v0, 0.0  ;;  %v1531_v30 = vld [vmem:[%s2122_s2] ss:$0 sm:$0xff]  ;;  %s483_s1 = sand.u32 1, %s1616_s19  }
  0x1f   : > { %494 = vadd.xlane.f32.xlu0 %v493_v1  ;;  %563 = vmatpush.bf16.msra.mxu0 %v1446_v15  ;;  %v1532_v35 = vld [vmem:[%s2097_s4] ss:$0 sm:$0xff] }
  0x20   : > { %v1539_v3 = vpop.eup %1538 }
  0x21   : > { %v497_v4 = vmul.f32 32.0, %v1539_v3  ;;  %vm501_vm1 = vweird.f32 %v1539_v3 }
  0x23   : > { %v498_v5 = vsub.f32 1.0, %v497_v4 }
  0x24   : > { %604 = vrot.lane.b32.xlu2 %v1814_v18, %s1628_s26 }
  0x25   : > { %v499_v6 = vmul.f32 %v1539_v3, %v498_v5  ;;  %621 = vrot.lane.b32.xlu1 %v1814_v18, %s1627_s0  ;;  %s1636_s0 = smov 52  }
  0x27   : > { %v500_v7 = vadd.f32 %v1539_v3, %v499_v6 }
  0x29   : > { %v1794_v8 = vsel %vm501_vm1, %v1539_v3, %v500_v7 }
  0x76   : > { %v590_v42 = vpop.permute.xlu2 %589 }
  0x7e   : > { %v605_v44 = vpop.permute.xlu2 %604 }
  0x8f   : > { %v609_v34 = vpop.permute.xlu1 %608 }
  0x92   : > { %v495_v9 = vpop.xlane.xlu0 %494 }
  0x93   : > { %v503_v10 = vmul.f32 %v1794_v8, %v495_v9 }
  0x95   : > { %v504_v11 = vsub.f32 %v1790_v0, %v503_v10 }
  0x97   : > { %v505_v12 = vmul.f32 %v504_v11, %v504_v11  ;;  %v622_v37 = vpop.permute.xlu1 %621 }
  0x99   : > { %v506_v13 = vsel %vm492_vm0, %v505_v12, 0.0 }
  0x9a   : > { %507 = vadd.xlane.f32.xlu0 %v506_v13 }
  0xae   : > { %617 = vrot.lane.b32.xlu0 %v1808_v16, %s1628_s26  ;;  %s1631_s26 = smov 100  }
 0x10d   : > { %v508_v17 = vpop.xlane.xlu0 %507 }
 0x10e   : > { %v509_v19 = vmul.f32 %v508_v17, %v1794_v8 }
 0x110   : > { %v510_v20 = vadd.f32 1e-05, %v509_v19 }
 0x112   : > { %1540 = vrsqrt.f32 %v510_v20  ;;  %vm517_vm3 = vweird.f32 %v510_v20 }
 0x118   : > { %v1541_v21 = vpop.eup %1540 }
 0x119   : > { %v512_v22 = vmul.f32 %v1541_v21, %v510_v20  ;;  %vm518_vm2 = vweird.f32 %v1541_v21 }
 0x11a   : > { %vm519_vm4 = vmor %vm517_vm3, %vm518_vm2 }
 0x11b   : > { %v513_v23 = vmul.f32 %v1541_v21, %v512_v22 }
 0x11d   : > { %v514_v24 = vmul.f32 0.5, %v513_v23 }
 0x11f   : > { %v515_v25 = vsub.f32 1.5, %v514_v24 }
 0x120   : > { %v618_v45 = vpop.permute.xlu0 %617 }
 0x121   : > { %v516_v26 = vmul.f32 %v1541_v21, %v515_v25 }
 0x123   : > { %v520_v28 = vsel %vm519_vm4, %v1541_v21, %v516_v26 }
 0x124   : > { %v521_v29 = vmul.f32 %v520_v28, %v504_v11 }
 0x126   : > { %v526_v31 = vmul.f32 %v1530_v27, %v521_v29 }
 0x128   : > { %v531_v32 = vadd.f32 %v1531_v30, %v526_v31 }
 0x12a   : > { %v532_v33 = vpack.c.bf16 %v531_v32, %v531_v32 }
 0x12c   : > { %1383 = vmatmul.msk.bf16.vlgmr.msra.gmra.mxu0 %vm492_vm0, %v532_v33 }
 0x1a9   : > { %v565_v36 = vpop.f32.mrf.mxu0 }
 0x1aa   : > { %v1832_v38 = vadd.f32 %v1532_v35, %v565_v36 }
 0x1ac   : > { %v611_v39 = vmul.f32 %v609_v34, %v1832_v38  ;;  %v624_v40 = vmul.f32 %v622_v37, %v1832_v38  ;;  %v592_v43 = vmul.f32 %v590_v42, %v1832_v38  ;;  %v620_v46 = vmul.f32 %v618_v45, %v1832_v38 }
 0x1ad   : > { %v607_v49 = vmul.f32 %v605_v44, %v1832_v38  ;;  %v587_v53 = vmul.f32 %v1808_v16, %v1832_v38  ;;  %v576_v3 = vmul.f32 %v1814_v18, %v1832_v38  ;;  %v1911_v28 = vpack.c.bf16 %v1832_v38, %v1832_v38 }
 0x1ae   : > { %626 = vrot.lane.b32.xlu2 %v624_v40, %s1630_s25  ;;  %613 = vrot.lane.b32.xlu1 %v611_v39, %s1630_s25 }
 0x1b1   : > { %v567_v41 = vpop.f32.mrf.mxu0 }
 0x1b6   : > { %578 = vrot.lane.b32.xlu1 %v1808_v16, %s1629_s30  ;;  %594 = vrot.lane.b32.xlu2 %v592_v43, %s1630_s25 }
 0x208   : > { %v627_v47 = vpop.permute.xlu2 %626 }
 0x209   : > { %v629_v48 = vadd.f32 %v627_v47, %v620_v46 }
 0x20b   : > { %635 = vrot.lane.b32.xlu2 %v629_v48, %s1631_s26  ;;  %s1638_s26 = smov 60   ;;  %v571_v48 = vlaneseq }
 0x210   : > { %v595_v52 = vpop.permute.xlu2 %594 }
 0x211   : > { %v597_v55 = vadd.f32 %v595_v52, %v587_v53 }
 0x213   : > { %738 = vrot.lane.b32.xlu2 %v1808_v16, %s1632_s20 }
 0x21b   : > { %716 = vrot.lane.b32.xlu2 %v1814_v18, %s1633_s27 }
 0x220   : > { %v614_v50 = vpop.permute.xlu1 %613 }
 0x221   : > { %v616_v51 = vsub.f32 %v607_v49, %v614_v50  ;;  %v1925_v50 = vshrl.u32 %v571_v48, 7 }
 0x223   : > { %631 = vrot.lane.b32.xlu1 %v616_v51, %s1634_s16  ;;  %955 = vrot.lane.b32.xlu2 %v1808_v16, %s1635_s17  ;;  %s2110_s16 = smov 24   ;;  %v1927_v51 = vand.u32 127, %v571_v48 }
 0x225   : > { %vm575_vm7 = vcmp.le.s32.totalorder %v1927_v51, %v1925_v50 }
 0x228   : > { %v579_v54 = vpop.permute.xlu1 %578 }
 0x229   : > { %v581_v56 = vmul.f32 %v579_v54, %v1832_v38 }
 0x22b   : > { %583 = vrot.lane.b32.xlu0 %v581_v56, %s1630_s25  ;;  %599 = vrot.lane.b32.xlu1 %v597_v55, %s1629_s30  ;;  %s1639_s30 = smov 20  }
 0x22c   : > { %877 = vrot.lane.b32.xlu2 %v1814_v18, %s1636_s0 }
 0x233   : > { %751 = vrot.lane.b32.xlu0 %v1814_v18, %s1632_s20  ;;  %703 = vrot.lane.b32.xlu1 %v1808_v16, %s1633_s27  ;;  %s1640_s20 = smov 8   ;;  %s1641_s27 = smov 56  }
 0x234   : > { %734 = vrot.lane.b32.xlu2 %v1814_v18, %s1637_s23 }
 0x23b   : > { %990 = vrot.lane.b32.xlu0 %v1808_v16, %s1638_s26  ;;  %1003 = vrot.lane.b32.xlu1 %v1814_v18, %s1638_s26  ;;  %s1645_s26 = smov 64  }
 0x243   : > { %968 = vrot.lane.b32.xlu0 %v1814_v18, %s1635_s17  ;;  %864 = vrot.lane.b32.xlu1 %v1808_v16, %s1636_s0  ;;  %s1643_s17 = smov 16   ;;  %s1644_s0 = smov 48  }
 0x24b   : > { %829 = vrot.lane.b32.xlu0 %v1808_v16, %s1639_s30  ;;  %842 = vrot.lane.b32.xlu1 %v1814_v18, %s1639_s30  ;;  %s1646_s30 = smov 88  }
 0x253   : > { %747 = vrot.lane.b32.xlu0 %v1808_v16, %s1637_s23 }
 0x25b   : > { %699 = vrot.lane.b32.xlu0 %v1814_v18, %s1640_s20 }
 0x265   : > { %v636_v57 = vpop.permute.xlu2 %635 }
 0x26d   : > { %v739_v58 = vpop.permute.xlu2 %738 }
 0x26e   : > { %v741_v59 = vmul.f32 %v739_v58, %v1832_v38 }
 0x270   : > { %743 = vrot.lane.b32.xlu1 %v741_v59, %s1630_s25 }
 0x275   : > { %v717_v60 = vpop.permute.xlu2 %716 }
 0x276   : > { %v719_v61 = vmul.f32 %v717_v60, %v1832_v38 }
 0x278   : > { %712 = vrot.lane.b32.xlu1 %v1808_v16, %s1640_s20  ;;  %721 = vrot.lane.b32.xlu0 %v719_v61, %s1630_s25 }
 0x27d   : > { %v956_v21 = vpop.permute.xlu2 %955 }
 0x27e   : > { %v958_v23 = vmul.f32 %v956_v21, %v1832_v38 }
 0x280   : > { %986 = vrot.lane.b32.xlu1 %v1814_v18, %s1641_s27 }
 0x286   : > { %v878_v24 = vpop.permute.xlu2 %877 }
 0x287   : > { %v880_v26 = vmul.f32 %v878_v24, %v1832_v38 }
 0x28e   : > { %v735_v32 = vpop.permute.xlu2 %734 }
 0x28f   : > { %v737_v34 = vmul.f32 %v735_v32, %v1832_v38 }
 0x295   : > { %v632_v62 = vpop.permute.xlu1 %631 }
 0x296   : > { %v638_v63 = vsel %vm602_vm5, %v632_v62, %v636_v57 }
 0x297   : > { %v640_v1 = vpack.c.bf16 %v638_v63, %v638_v63 }
 0x299   : > { %v646_v2 = vsel %vm641_vm6, %v640_v1, 0 }
 0x29a   : > { %655 = vmatpush.bf16.xpose.msra.mxu1 %v646_v2 }
 0x29d   : > { %v600_v4 = vpop.permute.xlu1 %599  ;;  %v584_v5 = vpop.permute.xlu0 %583 }
 0x29e   : > { %v586_v6 = vsub.f32 %v576_v3, %v584_v5 }
 0x2a0   : > { %v603_v7 = vsel %vm602_vm5, %v586_v6, %v600_v4 }
 0x2a1   : > { %v639_v9 = vpack.c.bf16 %v603_v7, %v603_v7 }
 0x2a3   : > { %1384 = vmatmul.msk.bf16.vlgmr.msra.gmra.mxu1 %vm641_vm6, %v639_v9 }
 0x2a5   : > { %v704_v10 = vpop.permute.xlu1 %703  ;;  %v752_v11 = vpop.permute.xlu0 %751 }
 0x2a6   : > { %v754_v12 = vmul.f32 %v752_v11, %v1832_v38  ;;  %v706_v15 = vmul.f32 %v704_v10, %v1832_v38 }
 0x2a8   : > { %756 = vrot.lane.b32.xlu2 %v754_v12, %s1630_s25 }
 0x2ad   : > { %v1004_v13 = vpop.permute.xlu1 %1003  ;;  %v991_v14 = vpop.permute.xlu0 %990 }
 0x2ae   : > { %v1006_v17 = vmul.f32 %v1004_v13, %v1832_v38  ;;  %v993_v19 = vmul.f32 %v991_v14, %v1832_v38 }
 0x2b0   : > { %1008 = vrot.lane.b32.xlu1 %v1006_v17, %s1630_s25  ;;  %708 = vrot.lane.b32.xlu2 %v706_v15, %s1630_s25 }
 0x2b1   : > { %995 = vrot.lane.b32.xlu0 %v993_v19, %s1630_s25 }
 0x2b5   : > { %v969_v20 = vpop.permute.xlu0 %968  ;;  %v865_v25 = vpop.permute.xlu1 %864 }
 0x2b6   : > { %v971_v22 = vmul.f32 %v969_v20, %v1832_v38  ;;  %v867_v27 = vmul.f32 %v865_v25, %v1832_v38 }
 0x2b8   : > { %964 = vrot.lane.b32.xlu1 %v1808_v16, %s2110_s16  ;;  %999 = vrot.lane.b32.xlu2 %v1808_v16, %s1641_s27 }
 0x2b9   : > { %951 = vrot.lane.b32.xlu0 %v1814_v18, %s2110_s16  ;;  %s1648_s16 = smov 120  }
 0x2bd   : > { %v830_v29 = vpop.permute.xlu0 %829 }
 0x2be   : > { %v832_v31 = vmul.f32 %v830_v29, %v1832_v38 }
 0x2c0   : > { %838 = vrot.lane.b32.xlu2 %v1808_v16, %s1643_s17  ;;  %973 = vrot.lane.b32.xlu1 %v971_v22, %s1630_s25 }
 0x2c1   : > { %960 = vrot.lane.b32.xlu0 %v958_v23, %s1630_s25 }
 0x2c8   : > { %873 = vrot.lane.b32.xlu1 %v1808_v16, %s1644_s0  ;;  %v843_v16 = vpop.permute.xlu1 %842 }
 0x2c9   : > { %860 = vrot.lane.b32.xlu0 %v1814_v18, %s1644_s0  ;;  %v845_v30 = vmul.f32 %v843_v16, %v1832_v38 }
 0x2d0   : > { %882 = vrot.lane.b32.xlu1 %v880_v26, %s1630_s25 }
 0x2d1   : > { %869 = vrot.lane.b32.xlu0 %v867_v27, %s1630_s25 }
 0x2d8   : > { %825 = vrot.lane.b32.xlu1 %v1814_v18, %s1643_s17  ;;  %v748_v18 = vpop.permute.xlu0 %747 }
 0x2d9   : > { %675 = vrot.lane.b32.xlu0 %v1911_v28, %s1645_s26  ;;  %v750_v36 = vmul.f32 %v748_v18, %v1832_v38  ;;  %s1647_s26 = smov 92  }
 0x2e0   : > { %847 = vrot.lane.b32.xlu1 %v845_v30, %s1630_s25  ;;  %v700_v37 = vpop.permute.xlu0 %699 }
 0x2e1   : > { %834 = vrot.lane.b32.xlu0 %v832_v31, %s1630_s25  ;;  %v702_v43 = vmul.f32 %v700_v37, %v1832_v38 }
 0x2e2   : > { %v744_v33 = vpop.permute.xlu1 %743 }
 0x2e3   : > { %v746_v35 = vsub.f32 %v737_v34, %v744_v33 }
 0x2e9   : > { %761 = vrot.lane.b32.xlu0 %v746_v35, %s1646_s30  ;;  %s1651_s30 = smov 72  }
 0x2ea   : > { %v713_v41 = vpop.permute.xlu1 %712  ;;  %v722_v44 = vpop.permute.xlu0 %721 }
 0x2eb   : > { %v715_v42 = vmul.f32 %v713_v41, %v1832_v38 }
 0x2ed   : > { %v724_v46 = vadd.f32 %v722_v44, %v715_v42 }
 0x2f2   : > { %v987_v49 = vpop.permute.xlu1 %986 }
 0x2f3   : > { %v989_v5 = vmul.f32 %v987_v49, %v1832_v38 }
 0x302   : > { %v757_v39 = vpop.permute.xlu2 %756 }
 0x303   : > { %v759_v40 = vadd.f32 %v757_v39, %v750_v36 }
 0x305   : > { %765 = vrot.lane.b32.xlu1 %v759_v40, %s1647_s26  ;;  %s1652_s26 = smov 108  }
 0x30a   : > { %v709_v45 = vpop.permute.xlu2 %708 }
 0x30b   : > { %v711_v47 = vsub.f32 %v702_v43, %v709_v45 }
 0x30d   : > { %726 = vrot.lane.b32.xlu0 %v711_v47, %s1648_s16  ;;  %730 = vrot.lane.b32.xlu1 %v724_v46, %s1630_s25  ;;  %s1649_s25 = smov 76   ;;  %s1650_s16 = smov 104  }
 0x312   : > { %v1000_v52 = vpop.permute.xlu2 %999 }
 0x313   : > { %v1002_v54 = vmul.f32 %v1000_v52, %v1832_v38 }
 0x31a   : > { %v839_v23 = vpop.permute.xlu2 %838 }
 0x31b   : > { %v841_v24 = vmul.f32 %v839_v23, %v1832_v38 }
 0x320   : > { %v657_v53 = vpop.f32.mrf.mxu1 }
 0x321   : > { %v661_v55 = vmul.f32 0.35355338, %v657_v53 }
 0x322   : > { %v1009_v56 = vpop.permute.xlu1 %1008 }
 0x323   : > { %v1011_v57 = vadd.f32 %v1009_v56, %v1002_v54  ;;  %v996_v58 = vpop.permute.xlu0 %995  ;;  %v662_v59 = vsel %vm575_vm7, %v661_v55, -1e+30 }
 0x324   : > { %v663_v60 = vsel %vm641_vm6, %v662_v59, -inf  ;;  %v998_v7 = vsub.f32 %v989_v5, %v996_v58 }
 0x325   : > { %664 = vmax.xlane.f32.xlu2 %v663_v60  ;;  %1017 = vrot.lane.b32.xlu0 %v1011_v57, %s1649_s25  ;;  %s1653_s25 = smov 84  }
 0x328   : > { %v659_v61 = vpop.f32.mrf.mxu1 }
 0x32a   : > { %v965_v62 = vpop.permute.xlu1 %964 }
 0x32b   : > { %v952_v63 = vpop.permute.xlu0 %951  ;;  %v967_v10 = vmul.f32 %v965_v62, %v1832_v38 }
 0x32c   : > { %v954_v1 = vmul.f32 %v952_v63, %v1832_v38 }
 0x332   : > { %v974_v2 = vpop.permute.xlu1 %973 }
 0x333   : > { %v961_v3 = vpop.permute.xlu0 %960  ;;  %v976_v14 = vadd.f32 %v974_v2, %v967_v10 }
 0x334   : > { %v963_v4 = vsub.f32 %v954_v1, %v961_v3 }
 0x336   : > { %978 = vrot.lane.b32.xlu1 %v963_v4, %s1650_s16  ;;  %s1654_s16 = smov 80  }
 0x33a   : > { %v874_v6 = vpop.permute.xlu1 %873 }
 0x33b   : > { %v861_v9 = vpop.permute.xlu0 %860  ;;  %v876_v11 = vmul.f32 %v874_v6, %v1832_v38 }
 0x33c   : > { %v863_v12 = vmul.f32 %v861_v9, %v1832_v38 }
 0x33d   : > { %1013 = vrot.lane.b32.xlu2 %v998_v7, %s1651_s30  ;;  %s1655_s30 = smov 116  }
 0x342   : > { %v883_v13 = vpop.permute.xlu1 %882 }
 0x343   : > { %v885_v15 = vadd.f32 %v883_v13, %v876_v11  ;;  %v870_v17 = vpop.permute.xlu0 %869 }
 0x344   : > { %v872_v19 = vsub.f32 %v863_v12, %v870_v17 }
 0x345   : > { %982 = vrot.lane.b32.xlu2 %v976_v14, %s1652_s26  ;;  %891 = vrot.lane.b32.xlu1 %v885_v15, %s1653_s25  ;;  %s1656_s26 = smov 112  }
 0x346   : > { %887 = vrot.lane.b32.xlu0 %v872_v19, %s1654_s16  ;;  %s1443_s16 = sshll.u32 %s1758_s22, 3  ;;  %s1295_s22 = scalar_lea.sflag [#allocation3], %s483_s1 }
 0x34a   : > { %v826_v20 = vpop.permute.xlu1 %825 }
 0x34b   : > { %v676_v21 = vpop.permute.xlu0 %675  ;;  %v828_v25 = vmul.f32 %v826_v20, %v1832_v38 }
 0x34c   : > { %v682_v22 = vsel %vm680_vm8, %v676_v21, 0 }
 0x34d   : > { %691 = vmatpush.bf16.msra.mxu2 %v682_v22 }
 0x352   : > { %v848_v26 = vpop.permute.xlu1 %847 }
 0x353   : > { %v850_v27 = vadd.f32 %v848_v26, %v841_v24  ;;  %v835_v16 = vpop.permute.xlu0 %834 }
 0x354   : > { %v837_v29 = vsub.f32 %v828_v25, %v835_v16 }
 0x355   : > { %856 = vrot.lane.b32.xlu0 %v850_v27, %s1655_s30 }
 0x356   : > { %852 = vrot.lane.b32.xlu2 %v837_v29, %s1656_s26 }
 0x35b   : > { %v762_v30 = vpop.permute.xlu0 %761 }
 0x35e   : > { %802 = vrot.lane.b32.xlu2 %v1911_v28, %s1641_s27 }
 0x377   : > { %v766_v31 = vpop.permute.xlu1 %765 }
 0x378   : > { %v768_v32 = vsel %vm602_vm5, %v762_v30, %v766_v31 }
 0x379   : > { %v770_v33 = vpack.c.bf16 %v768_v32, %v768_v32 }
 0x37b   : > { %v775_v34 = vsel %vm641_vm6, %v770_v33, 0 }
 0x37c   : > { %784 = vmatpush.bf16.xpose.msrb.mxu2 %v775_v34 }
 0x37f   : > { %v727_v38 = vpop.permute.xlu0 %726  ;;  %v731_v37 = vpop.permute.xlu1 %730 }
 0x380   : > { %v733_v53 = vsel %vm602_vm5, %v727_v38, %v731_v37 }
 0x381   : > { %v769_v54 = vpack.c.bf16 %v733_v53, %v733_v53 }
 0x397   : > { %v1018_v39 = vpop.permute.xlu0 %1017 }
 0x398   : > { %v665_v35 = vpop.xlane.xlu2 %664 }
 0x399   : > { %v666_v18 = vsub.f32 %v662_v59, %v665_v35 }
 0x39b   : > { %v667_v36 = vmul.f32 1.442695, %v666_v18 }
 0x39d   : > { %1542 = vpow2.f32 %v667_v36 }
 0x3a0   : > { %v1014_v40 = vpop.permute.xlu2 %1013 }
 0x3a1   : > { %v1020_v41 = vsel %vm602_vm5, %v1014_v40, %v1018_v39 }
 0x3a2   : > { %v1022_v42 = vpack.c.bf16 %v1020_v41, %v1020_v41 }
 0x3a3   : > { %v1949_v43 = vpop.eup %1542 }
 0x3a4   : > { %v1027_v44 = vsel %vm641_vm6, %v1022_v42, 0  ;;  %v672_v45 = vpack.c.bf16 %v1949_v43, %v1949_v43  ;;  %v669_v40 = vsel %vm641_vm6, %v1949_v43, 0.0 }
 0x3a5   : > { %1036 = vmatpush.bf16.xpose.msra.mxu3 %v1027_v44 }
 0x3a6   : > { %1385 = vmatmul.msk.bf16.vlgmr.msra.gmra.mxu2 %vm641_vm6, %v672_v45 }
 0x3a8   : > { %v979_v46 = vpop.permute.xlu1 %978  ;;  %v983_v47 = vpop.permute.xlu2 %982 }
 0x3a9   : > { %v985_v48 = vsel %vm602_vm5, %v979_v46, %v983_v47 }
 0x3aa   : > { %v1021_v49 = vpack.c.bf16 %v985_v48, %v985_v48 }
 0x3ac   : > { %1390 = vmatmul.msk.bf16.vlgmr.msra.gmra.mxu3 %vm641_vm6, %v1021_v49 }
 0x3b0   : > { %v853_v52 = vpop.permute.xlu2 %852 }
 0x3b6   : > { %1386 = vmatmul.msk.bf16.vlgmr.msrb.gmra.mxu2 %vm641_vm6, %v769_v54 }
 0x3b7   : > { %v892_v55 = vpop.permute.xlu1 %891 }
 0x3b8   : > { %v888_v56 = vpop.permute.xlu0 %887  ;;  %v803_v57 = vpop.permute.xlu2 %802 }
 0x3b9   : > { %v894_v58 = vsel %vm602_vm5, %v888_v56, %v892_v55  ;;  %v808_v59 = vsel %vm680_vm8, %v803_v57, 0 }
 0x3ba   : > { %v896_v60 = vpack.c.bf16 %v894_v58, %v894_v58  ;;  %817 = vmatpush.bf16.msra.mxu2 %v808_v59  ;;  %v1449_v58 = vld [vmem:[%s2098_s5 + $0x8] sm:$0xff]  ;;  %v1448_v59 = vld [vmem:[%s2098_s5] sm:$0xff] }
 0x3bc   : > { %v901_v61 = vsel %vm641_vm6, %v896_v60, 0 }
 0x3bd   : > { %910 = vmatpush.bf16.xpose.msrb.mxu0 %v901_v61 }
 0x3c5   : > { %1124 = vmatpush.bf16.msra.mxu0 %v1449_v58 }
 0x3c7   : > { %v857_v62 = vpop.permute.xlu0 %856 }
 0x3c8   : > { %v859_v63 = vsel %vm602_vm5, %v853_v52, %v857_v62 }
 0x3c9   : > { %v895_v1 = vpack.c.bf16 %v859_v63, %v859_v63  ;;  %1125 = vmatpush.bf16.msra.mxu0 %v1448_v59 }
 0x3cb   : > { %1388 = vmatmul.msk.bf16.vlgmr.msrb.gmra.mxu0 %vm641_vm6, %v895_v1 }
 0x429   : > { %v1964_v2 = vpop.f32.mrf.mxu2 }
 0x42f   : > { %v1038_v3 = vpop.f32.mrf.mxu3 }
 0x430   : > { %v1042_v4 = vmul.f32 0.35355338, %v1038_v3 }
 0x431   : > { %v695_v5 = vpop.f32.mrf.mxu2 }
 0x432   : > { %v1043_v6 = vsel %vm575_vm7, %v1042_v4, -1e+30 }
 0x433   : > { %v1044_v7 = vsel %vm641_vm6, %v1043_v6, -inf }
 0x434   : > { %1045 = vmax.xlane.f32.xlu0 %v1044_v7 }
 0x437   : > { %v1040_v9 = vpop.f32.mrf.mxu3 }
 0x438   : > { %v1533_v9 = vld [vmem:[%s2099_s6] ss:$0 sm:$0xff] }
 0x439   : > { %v786_v10 = vpop.f32.mrf.mxu2 }
 0x43a   : > { %v790_v11 = vmul.f32 0.35355338, %v786_v10 }
 0x43c   : > { %v791_v12 = vsel %vm575_vm7, %v790_v11, -1e+30 }
 0x43d   : > { %v792_v13 = vsel %vm641_vm6, %v791_v12, -inf }
 0x43e   : > { %793 = vmax.xlane.f32.xlu1 %v792_v13 }
 0x441   : > { %v788_v14 = vpop.f32.mrf.mxu2 }
 0x448   : > { %928 = vrot.lane.b32.xlu0 %v1911_v28, %s1644_s0  ;;  %v912_v15 = vpop.f32.mrf.mxu0  ;;  %s1305_s0 = scalar_lea.hbm %s2108_s15, %s1443_s16 }
 0x449   : > { %v916_v17 = vmul.f32 0.35355338, %v912_v15  ;;  %s1309_s2 = sshll.u32 %s1305_s0, 4  ;;  %s1310_s2 = int_to_ptr.hbm [resolvable:$true] %s1309_s2 }
 0x44a   : > { %s1576_s3 = sshra.s32 %s1310_s2, 4  ;;  %s1577_s3 = int_to_ptr.hbm [resolvable:$true] %s1576_s3 }
 0x44b   : > { %v917_v19 = vsel %vm575_vm7, %v916_v17, -1e+30  ;;  %s1578_s30 = scalar_lea.hbm %s1577_s3, 8  ;;  %p1583_p0 = scmp.lt.s32.totalorder %s1577_s3, %s2108_s15 }
 0x44c   : > { %v918_v20 = vsel %vm641_vm6, %v917_v19, -inf  ;;  %p1579_p11 = scmp.ne.s32.totalorder %s1577_s3, %s1578_s30 }
 0x44d   : > { %919 = vmax.xlane.f32.xlu2 %v918_v20 }
 0x44e   : > { %p1580_p12 = pnand %p1579_p11, %p1775_p5 }
 0x450   : > { %v914_v21 = vpop.f32.mrf.mxu0  ;;  %p1581_p13 = pneg %p1580_p12 }
 0x451   : > { %v1451_v21 = vld [vmem:[%s2102_s9 + $0x8] sm:$0xff] }
 0x457   : > { %1054 = vrot.lane.b32.xlu1 %v1911_v28, %s1637_s23  ;;  %s2123_s23 = smov 24  }
 0x4a7   : > { %v1046_v22 = vpop.xlane.xlu0 %1045 }
 0x4a8   : > { %v1047_v23 = vsub.f32 %v1043_v6, %v1046_v22  ;;  %v1459_v22 = vld [vmem:[%s2104_s11 + $0x38] sm:$0xff] }
 0x4a9   : > { %1279 = vmatpush.bf16.msrb.mxu3 %v1459_v22 }
 0x4aa   : > { %v1048_v24 = vmul.f32 1.442695, %v1047_v23 }
 0x4ac   : > { %1544 = vpow2.f32 %v1048_v24 }
 0x4b1   : > { %v794_v25 = vpop.xlane.xlu1 %793 }
 0x4b2   : > { %v1545_v26 = vpop.eup %1544  ;;  %v795_v27 = vsub.f32 %v791_v12, %v794_v25  ;;  %v1458_v25 = vld [vmem:[%s2104_s11 + $0x30] sm:$0xff] }
 0x4b3   : > { %v1050_v16 = vsel %vm641_vm6, %v1545_v26, 0.0  ;;  %v1053_v39 = vpack.c.bf16 %v1545_v26, %v1545_v26  ;;  %1280 = vmatpush.bf16.msrb.mxu3 %v1458_v25 }
 0x4b4   : > { %v796_v29 = vmul.f32 1.442695, %v795_v27  ;;  %1051 = vadd.xlane.f32.xlu0 %v1050_v16 }
 0x4b6   : > { %1546 = vpow2.f32 %v796_v29 }
 0x4ba   : > { %v929_v50 = vpop.permute.xlu0 %928 }
 0x4bb   : > { %v934_v51 = vsel %vm680_vm8, %v929_v50, 0 }
 0x4bc   : > { %v1547_v30 = vpop.eup %1546  ;;  %943 = vmatpush.bf16.msrb.mxu1 %v934_v51 }
 0x4bd   : > { %v801_v31 = vpack.c.bf16 %v1547_v30, %v1547_v30  ;;  %v798_v28 = vsel %vm641_vm6, %v1547_v30, 0.0 }
 0x4be   : > { %799 = vadd.xlane.f32.xlu2 %v798_v28 }
 0x4bf   : > { %1387 = vmatmul.msk.bf16.vlgmr.msra.gmra.mxu2 %vm641_vm6, %v801_v31 }
 0x4c0   : > { %v920_v32 = vpop.xlane.xlu2 %919  ;;  %1194 = vmatpush.bf16.msra.mxu1 %v1451_v21 }
 0x4c1   : > { %v921_v33 = vsub.f32 %v917_v19, %v920_v32  ;;  %v1535_v32 = vld [vmem:[%s2101_s8] ss:$0 sm:$0xff] }
 0x4c3   : > { %v922_v34 = vmul.f32 1.442695, %v921_v33 }
 0x4c5   : > { %1548 = vpow2.f32 %v922_v34 }
 0x4c9   : > { %v1055_v38 = vpop.permute.xlu1 %1054 }
 0x4ca   : > { %v1060_v35 = vsel %vm680_vm8, %v1055_v38, 0 }
 0x4cb   : > { %v1549_v18 = vpop.eup %1548  ;;  %1069 = vmatpush.bf16.msrb.mxu2 %v1060_v35  ;;  %v1457_v35 = vld [vmem:[%s2104_s11 + $0x28] sm:$0xff] }
 0x4cc   : > { %v924_v36 = vsel %vm641_vm6, %v1549_v18, 0.0  ;;  %v927_v37 = vpack.c.bf16 %v1549_v18, %v1549_v18  ;;  %1281 = vmatpush.bf16.msrb.mxu3 %v1457_v35  ;;  %v1456_v18 = vld [vmem:[%s2104_s11 + $0x20] sm:$0xff] }
 0x4cd   : > { %925 = vadd.xlane.f32.xlu2 %v924_v36  ;;  %v1455_v36 = vld [vmem:[%s2104_s11 + $0x18] sm:$0xff] }
 0x4ce   : > { %1389 = vmatmul.msk.bf16.vlgmr.msrb.gmra.mxu1 %vm641_vm6, %v927_v37  ;;  %v1454_v37 = vld [vmem:[%s2104_s11 + $0x10] sm:$0xff] }
 0x4cf   : > { %1391 = vmatmul.msk.bf16.vlgmr.msrb.gmra.mxu2 %vm641_vm6, %v1053_v39  ;;  %v1453_v39 = vld [vmem:[%s2104_s11 + $0x8] sm:$0xff] }
 0x4d0   : > { %1282 = vmatpush.bf16.msrb.mxu3 %v1456_v18 }
 0x4d4   : > { %1283 = vmatpush.bf16.msrb.mxu3 %v1455_v36 }
 0x4d5   : > { %670 = vadd.xlane.f32.xlu2 %v669_v40  ;;  %v1452_v40 = vld [vmem:[%s2104_s11] sm:$0xff] }
 0x4d8   : > { %1284 = vmatpush.bf16.msrb.mxu3 %v1454_v37 }
 0x4dc   : > { %1285 = vmatpush.bf16.msrb.mxu3 %v1453_v39 }
 0x4e0   : > { %1286 = vmatpush.bf16.msrb.mxu3 %v1452_v40 }
 0x527   : > { %v1052_v47 = vpop.xlane.xlu0 %1051 }
 0x531   : > { %v800_v41 = vpop.xlane.xlu2 %799 }
 0x532   : > { %1550 = vrcp.f32 %v800_v41  ;;  %v1536_v41 = vld [vmem:[%s2103_s10] ss:$0 sm:$0xff] }
 0x538   : > { %v1551_v42 = vpop.eup %1550 }
 0x540   : > { %v926_v44 = vpop.xlane.xlu2 %925 }
 0x541   : > { %1552 = vrcp.f32 %v926_v44 }
 0x542   : > { %v819_v45 = vpop.f32.mrf.mxu2  ;;  %1554 = vrcp.f32 %v1052_v47 }
 0x543   : > { %v824_v46 = vmul.f32 %v1551_v42, %v819_v45 }
 0x545   : > { %1078 = vrot.lane.b32.xlu1 %v824_v46, %s1640_s20 }
 0x547   : > { %v1553_v49 = vpop.eup %1552 }
 0x548   : > { %v1555_v54 = vpop.eup %1554  ;;  %v671_v60 = vpop.xlane.xlu2 %670 }
 0x549   : > { %1556 = vrcp.f32 %v671_v60 }
 0x54a   : > { %v821_v48 = vpop.f32.mrf.mxu2 }
 0x54b   : > { %v945_v52 = vpop.f32.mrf.mxu1 }
 0x54c   : > { %v950_v53 = vmul.f32 %v1553_v49, %v945_v52 }
 0x54e   : > { %1082 = vrot.lane.b32.xlu2 %v950_v53, %s1643_s17  ;;  %s1373_s17 = sshll.u32 %s483_s1, 3 }
 0x54f   : > { %v1557_v61 = vpop.eup %1556  ;;  %s485_s20 = scalar_lea.vmem [#allocation2], %s1373_s17  ;;  %s1582_s17 = scalar_lea.hbm %s2108_s15, 16 }
 0x550   : > { %v698_v63 = vmul.f32 %v1557_v61, %v1964_v2  ;;  %s1307_s25 = sshll.u32 %s485_s20, 4  ;;  %p1584_p1 = scmp.lt.s32.totalorder %s1582_s17, %s1578_s30  ;;  %s1308_s25 = int_to_ptr.vmem [resolvable:$true] %s1307_s25 }
 0x552   : > { %v1071_v43 = vpop.f32.mrf.mxu2  ;;  %p1585_p2 = por %p1584_p1, %p1583_p0 }
 0x553   : > { %v1076_v55 = vmul.f32 %v1555_v54, %v1071_v43  ;;  %v947_v56 = vpop.f32.mrf.mxu1 }
 0x554   : > { %p1586_p3 = pnand %p1585_p2, %p1581_p13 }
 0x555   : > { %1086 = vrot.lane.b32.xlu1 %v1076_v55, %s2123_s23 }
 0x55a   : > { %v1073_v57 = vpop.f32.mrf.mxu2 }
 0x55b   : > { %v1537_v57 = vld [vmem:[%s2105_s12] ss:$0 sm:$0xff] }
 0x5a8   : > { %v1083_v3 = vpop.permute.xlu2 %1082 }
 0x5b7   : > { %v1079_v62 = vpop.permute.xlu1 %1078 }
 0x5b8   : > { %v1089_v1 = vsel %vm641_vm6, %v698_v63, %v1079_v62 }
 0x5b9   : > { %v1091_v4 = vsel %vm1090_vm9, %v1089_v1, %v1083_v3 }
 0x5c7   : > { %v1087_v5 = vpop.permute.xlu1 %1086 }
 0x5c8   : > { %v1093_v6 = vsel %vm1092_vm10, %v1091_v4, %v1087_v5 }
 0x5c9   : > { %v1094_v7 = vpack.c.bf16 %v1093_v6, %v1093_v6 }
 0x5cb   : > { %1400 = vmatmul.msk.bf16.vlgmr.msra.gmra.mxu0 %vm492_vm0, %v1094_v7 }
 0x648   : > { %v1127_v10 = vpop.f32.mrf.mxu0 }
 0x649   : > { %v1128_v11 = vadd.f32 %v1533_v9, %v1127_v10 }
 0x64b   : > { %v2008_v12 = vadd.f32 %v1128_v11, %v1790_v0  ;;  %v1450_v0 = vld [vmem:[%s2102_s9] sm:$0xff] }
 0x64c   : > { %1195 = vmatpush.bf16.msra.mxu1 %v1450_v0 }
 0x64d   : > { %v1132_v2 = vsel %vm492_vm0, %v2008_v12, 0.0 }
 0x64e   : > { %1133 = vadd.xlane.f32.xlu1 %v1132_v2 }
 0x650   : > { %v1129_v13 = vpop.f32.mrf.mxu0 }
 0x6c1   : > { %v1134_v14 = vpop.xlane.xlu1 %1133 }
 0x6c2   : > { %v1135_v15 = vmul.f32 %v1134_v14, %v1794_v8 }
 0x6c4   : > { %v1136_v17 = vsub.f32 %v2008_v12, %v1135_v15 }
 0x6c6   : > { %v1137_v19 = vmul.f32 %v1136_v17, %v1136_v17 }
 0x6c8   : > { %v1138_v20 = vsel %vm492_vm0, %v1137_v19, 0.0 }
 0x6c9   : > { %1139 = vadd.xlane.f32.xlu2 %v1138_v20 }
 0x73c   : > { %v1140_v23 = vpop.xlane.xlu2 %1139 }
 0x73d   : > { %v1141_v24 = vmul.f32 %v1140_v23, %v1794_v8  ;;  %v1534_v8 = vld [vmem:[%s2100_s7] ss:$0 sm:$0xff] }
 0x73f   : > { %v1142_v26 = vadd.f32 1e-05, %v1141_v24 }
 0x741   : > { %1558 = vrsqrt.f32 %v1142_v26  ;;  %vm1149_vm12 = vweird.f32 %v1142_v26 }
 0x747   : > { %v1559_v27 = vpop.eup %1558 }
 0x748   : > { %v1144_v16 = vmul.f32 %v1559_v27, %v1142_v26  ;;  %vm1150_vm11 = vweird.f32 %v1559_v27 }
 0x749   : > { %vm1151_vm13 = vmor %vm1149_vm12, %vm1150_vm11 }
 0x74a   : > { %v1145_v29 = vmul.f32 %v1559_v27, %v1144_v16 }
 0x74c   : > { %v1146_v50 = vmul.f32 0.5, %v1145_v29 }
 0x74e   : > { %v1147_v51 = vsub.f32 1.5, %v1146_v50 }
 0x750   : > { %v1148_v30 = vmul.f32 %v1559_v27, %v1147_v51 }
 0x752   : > { %v1152_v31 = vsel %vm1151_vm13, %v1559_v27, %v1148_v30 }
 0x753   : > { %v1153_v28 = vmul.f32 %v1152_v31, %v1136_v17 }
 0x755   : > { %v1158_v33 = vmul.f32 %v1534_v8, %v1153_v28 }
 0x757   : > { %v1163_v34 = vadd.f32 %v1535_v32, %v1158_v33 }
 0x759   : > { %v1164_v38 = vpack.c.bf16 %v1163_v34, %v1163_v34 }
 0x75b   : > { %1409 = vmatmul.msk.bf16.vlgmr.msra.gmra.mxu1 %vm492_vm0, %v1164_v38 }
 0x7d8   : > { %v1197_v42 = vpop.f32.mrf.mxu1 }
 0x7d9   : > { %v1198_v44 = vadd.f32 %v1536_v41, %v1197_v42 }
 0x7db   : > { %v1202_v45 = vmul.f32 0.044715, %v1198_v44  ;;  %v1201_v54 = vmul.f32 0.5, %v1198_v44 }
 0x7dd   : > { %v1203_v46 = vmul.f32 %v1202_v45, %v1198_v44 }
 0x7df   : > { %v1204_v47 = vmul.f32 %v1203_v46, %v1198_v44 }
 0x7e0   : > { %v1199_v48 = vpop.f32.mrf.mxu1 }
 0x7e1   : > { %v1205_v49 = vadd.f32 %v1204_v47, %v1198_v44 }
 0x7e3   : > { %v1206_v52 = vmul.f32 0.7978846, %v1205_v49 }
 0x7e5   : > { %1560 = vtanh.f32 %v1206_v52 }
 0x7eb   : > { %v1561_v53 = vpop.eup %1560 }
 0x7ec   : > { %v1208_v43 = vadd.f32 1.0, %v1561_v53 }
 0x7ee   : > { %v1209_v55 = vmul.f32 %v1208_v43, %v1201_v54 }
 0x7f0   : > { %v1210_v56 = vpack.c.bf16 %v1209_v55, %v1209_v55 }
 0x7f2   : > { %1287 = vmatmul.bf16.vlgmr.msrb.gmra.mxu3 %v1210_v56 }
 0x875   : > { %v1288_v58 = vpop.f32.mrf.mxu3 }
 0x876   : > { %v1289_v59 = vadd.f32 %v1537_v57, %v1288_v58 }
 0x878   : > { %v1292_v60 = vadd.f32 %v1289_v59, %v2008_v12 }
 0x87a   : > { %1293 = vst.msk [vmem:[%s485_s20] sm:$0xff] %vm492_vm0, %v1292_v60 }
 0x87b   : > { %1589 = shalt.err (!%p1586_p3)
}
 0x87c   : > { %1460 = dma.vmem_to_hbm [thread:$0]  (%p1775_p5), %s1308_s25, 128, %s1310_s2, %s1295_s22  }
 0x87d   : > { %v1290_v61 = vpop.f32.mrf.mxu3 }
 0x87e PF: > { %p1466_p4 = scmp.ge.s32.totalorder %s1624_s21, 2  ;;  %s1321_s1 = sand.u32 1, %s1612_s18  }
 0x87f   : > { %s1322_s0 = scalar_lea.sflag [#allocation3], %s1321_s1 }
 0x880   : > { %p1463_p7 = pnand %p1466_p4, %p1779_p6 }
 0x882   : > { %p1464_p8 = pneg %p1463_p7 }
 0x884   : > { %1607 = dma.done.wait (%p1464_p8), %s1322_s0, 128  }
 0x885   : > { %1609 = vsyncadd (%p1464_p8), %s1322_s0, 4294967168  ;;  %s2124_s3 = sld [smem:[#allocation5_spill]]  ;;  %p25_p9 = scmp.ge.s32.totalorder %s1762_s24, 4  }
 0x886   : > { %s2125_s20 = sld [smem:[#allocation6_spill]]  ;;  %s2126_s18 = smov %s1616_s19 }
 0x887   : > { %s2128_s21 = smov %s1762_s24  ;;  %27 = sbr.rel (!%p25_p9) target bundleno = 8 (0x8), region = 115 }
 0x88b   : > { %s2127_s19 = smov %s2124_s3 }
 0x88c   :  { %1328 = vsyncpa [#allocation3], 1 }
 0x88d   :  { %1330 = vsyncpa [#allocation3 + $0x1], 1 }

</bundles_post_ra>
